<compile_context>
chip_gen: v7x
topology: tpu7x:2x2x1
jax: 0.10.0
libtpu: 0.0.40
codegen_flags: <defaults>
</compile_context>

<pallas_src>
import functools

import jax
import jax.numpy as jnp
from jax import lax
from jax.experimental import pallas as pl
from jax.experimental.pallas import tpu as pltpu

LN_EPS = 1e-5
K = 7              # conv kernel size
HALO = 16          # halo rows fetched each side (>= K//2, multiple of 16 so
                   # bf16 activation blocks stay (16,128)-tile aligned)
TILE_ALIGN = 16    # time-tile alignment (bf16 sublane packing = 16 rows)
LANE = 128
ACT_DTYPE = jnp.bfloat16   # inter-layer activation storage dtype


# ------------------------------ kernel helpers ------------------------------


def _layernorm(x, g, b):
    # single-pass statistics: var = E[x^2] - mu^2 (one cross-lane pass saved)
    mu = jnp.mean(x, axis=-1, keepdims=True)
    ms = jnp.mean(x * x, axis=-1, keepdims=True)
    var = ms - mu * mu
    return (x - mu) * lax.rsqrt(var + LN_EPS) * g + b


def _window(main, before_ref, after_ref):
    # Build a contiguous (tile_t + 2*HALO, C) window around the current tile.
    # Halo blocks come from the same activation array (separate BlockSpecs);
    # at the sequence boundaries they are replaced by zeros (= conv zero pad).
    t = pl.program_id(1)
    nt = pl.num_programs(1)
    before = before_ref[0]
    after = after_ref[0]
    before = jnp.where(t == 0, jnp.zeros_like(before), before)
    after = jnp.where(t == nt - 1, jnp.zeros_like(after), after)
    return jnp.concatenate([before, main, after], axis=0)


def _conv_taps(xw_f32, tile_t):
    # Yield the 7 conv-tap views of the window via incremental sublane
    # rotations (XLU) + aligned [:tile_t] slices — no unaligned copies.
    w_rows = tile_t + 2 * HALO
    base = HALO - K // 2
    cur = pltpu.roll(xw_f32, shift=w_rows - base, axis=0)
    taps = []
    for k in range(K):
        taps.append(cur[:tile_t, :])
        if k < K - 1:
            cur = pltpu.roll(cur, shift=w_rows - 1, axis=0)
    return taps


def _store_rows(o_ref, out, tile_t, t_valid):
    # Rows >= T (the real sequence length) must be stored as exact zeros so the
    # next layer's conv sees correct zero padding.  Only the tile containing
    # row T pays for the mask; all other tiles store unmasked.
    t = pl.program_id(1)
    row0 = t * tile_t
    needs_mask = row0 + tile_t > t_valid

    @pl.when(needs_mask)
    def _():
        row = row0 + lax.broadcasted_iota(jnp.int32, (tile_t, 1), 0)
        o_ref[0] = jnp.where(row < t_valid, out, 0.0).astype(o_ref.dtype)

    @pl.when(jnp.logical_not(needs_mask))
    def _():
        o_ref[0] = out.astype(o_ref.dtype)


# ----------------------------- Pallas kernels ------------------------------


def _in_conv_ln_kernel(xm_ref, xb_ref, xa_ref, w_ref, b_ref, g_ref, bb_ref,
                       o_ref, *, tile_t, t_valid):
    # in_conv (k=7, pad=3) as a single im2col matmul, fused with LayerNorm.
    xw = _window(xm_ref[0], xb_ref, xa_ref).astype(jnp.float32)
    cols = _conv_taps(xw, tile_t)                         # 7 x (tile_t, Cin_p)
    xcat = jnp.concatenate(cols, axis=-1)                 # (tile_t, K*Cin_p)
    y = jnp.dot(xcat.astype(jnp.bfloat16), w_ref[...],
                preferred_element_type=jnp.float32) + b_ref[...]
    y = _layernorm(y, g_ref[...], bb_ref[...])
    _store_rows(o_ref, y, tile_t, t_valid)


def _convnext_kernel(xm_ref, xb_ref, xa_ref, dww_ref, dwb_ref, lng_ref, lnb_ref,
                     w1_ref, b1_ref, w2_ref, b2_ref, s_ref, o_ref,
                     *, tile_t, t_valid):
    # depthwise conv(k=7) -> LayerNorm -> Linear -> GELU(tanh) -> Linear ->
    # scale -> residual add, all fused for one (batch, time-tile) block.
    xw = _window(xm_ref[0], xb_ref, xa_ref).astype(jnp.float32)
    res = xw[HALO:HALO + tile_t, :]                       # aligned slice, f32
    dww = dww_ref[...]                                    # (K, C) f32
    acc = jnp.zeros(res.shape, jnp.float32) + dwb_ref[...]
    for k, tap in enumerate(_conv_taps(xw, tile_t)):
        acc = acc + tap * dww[k:k + 1, :]
    h = _layernorm(acc, lng_ref[...], lnb_ref[...])       # f32 statistics
    h = jnp.dot(h.astype(jnp.bfloat16), w1_ref[...],
                preferred_element_type=jnp.float32) + b1_ref[...]
    h = jax.nn.gelu(h, approximate=True)                  # tanh -> EUP slot
    h = jnp.dot(h.astype(jnp.bfloat16), w2_ref[...],
                preferred_element_type=jnp.float32) + b2_ref[...]
    out = res + s_ref[...] * h
    _store_rows(o_ref, out, tile_t, t_valid)


def _head_kernel(x_ref, g_ref, b_ref, wo_ref, bo_ref, o_ref):
    # final LayerNorm + 1x1 conv; output kept as one lane-dense (tile_t, Cout_p)
    # slab — mag/phase split and exp/cos/sin happen outside (before iSTFT).
    h = _layernorm(x_ref[0].astype(jnp.float32), g_ref[...], b_ref[...])
    o_ref[0] = jnp.dot(h.astype(jnp.bfloat16), wo_ref[...],
                       preferred_element_type=jnp.float32) + bo_ref[...]


# --------------------------- pallas_call wrappers ---------------------------


def _param_spec(shape):
    # Constant-index parameter block: DMA fires once, single-buffer it so the
    # second (dead) buffer does not eat VMEM.
    zeros = (0,) * len(shape)
    return pl.BlockSpec(shape, lambda b, t: zeros, pipeline_mode=pl.Buffered(1))


def _act_specs(Tp, tile_t, C):
    nbh = tile_t // HALO
    last = Tp // HALO - 1
    main = pl.BlockSpec((1, tile_t, C), lambda b, t: (b, t, 0))
    before = pl.BlockSpec(
        (1, HALO, C), lambda b, t: (b, jnp.maximum(t * nbh - 1, 0), 0))
    after = pl.BlockSpec(
        (1, HALO, C), lambda b, t: (b, jnp.minimum((t + 1) * nbh, last), 0))
    return main, before, after


@functools.lru_cache(maxsize=None)
def _vmem_limit_bytes():
    # Generation-aware clamp: keep headroom on v7x (64 MiB physical VMEM),
    # allow more on v5e/v6e (128 MiB).
    try:
        cap = int(getattr(pltpu.get_tpu_info(), "vmem_capacity_bytes",
                          64 << 20))
    except Exception:
        cap = 64 << 20
    return (100 << 20) if cap >= (128 << 20) else (48 << 20)


def _compiler_params():
    return pltpu.CompilerParams(
        dimension_semantics=("parallel", "parallel"),
        vmem_limit_bytes=_vmem_limit_bytes())


def in_conv_ln_call(x, w, b, g, beta, *, t_valid, tile_t):
    B, Tp, Cin = x.shape
    Cout = w.shape[-1]
    n_t = Tp // tile_t
    main, before, after = _act_specs(Tp, tile_t, Cin)
    return pl.pallas_call(
        functools.partial(_in_conv_ln_kernel, tile_t=tile_t, t_valid=t_valid),
        out_shape=jax.ShapeDtypeStruct((B, Tp, Cout), ACT_DTYPE),
        grid=(B, n_t),
        in_specs=[main, before, after,
                  _param_spec(w.shape), _param_spec(b.shape),
                  _param_spec(g.shape), _param_spec(beta.shape)],
        out_specs=pl.BlockSpec((1, tile_t, Cout), lambda bb, t: (bb, t, 0)),
        compiler_params=_compiler_params(),
        cost_estimate=pl.CostEstimate(
            flops=2 * B * Tp * (K * Cin) * Cout,
            transcendentals=0,
            bytes_accessed=B * Tp * (Cin + Cout) * 2 + int(w.size) * 2),
    )(x, x, x, w, b, g, beta)


def convnext_call(h, lp, *, t_valid, tile_t):
    B, Tp, C = h.shape
    H = lp["w1"].shape[-1]
    n_t = Tp // tile_t
    main, before, after = _act_specs(Tp, tile_t, C)
    return pl.pallas_call(
        functools.partial(_convnext_kernel, tile_t=tile_t, t_valid=t_valid),
        out_shape=jax.ShapeDtypeStruct((B, Tp, C), ACT_DTYPE),
        grid=(B, n_t),
        in_specs=[main, before, after,
                  _param_spec(lp["dw_w"].shape), _param_spec(lp["dw_b"].shape),
                  _param_spec(lp["ln_g"].shape), _param_spec(lp["ln_b"].shape),
                  _param_spec(lp["w1"].shape), _param_spec(lp["b1"].shape),
                  _param_spec(lp["w2"].shape), _param_spec(lp["b2"].shape),
                  _param_spec(lp["scale"].shape)],
        out_specs=pl.BlockSpec((1, tile_t, C), lambda bb, t: (bb, t, 0)),
        compiler_params=_compiler_params(),
        cost_estimate=pl.CostEstimate(
            flops=B * Tp * (4 * C * H + 2 * K * C),
            transcendentals=B * Tp * H,
            bytes_accessed=2 * B * Tp * C * 2 + 4 * C * H),
    )(h, h, h, lp["dw_w"], lp["dw_b"], lp["ln_g"], lp["ln_b"],
      lp["w1"], lp["b1"], lp["w2"], lp["b2"], lp["scale"])


def head_call(h, g, b, w, bias, *, tile_t):
    B, Tp, C = h.shape
    Cout = w.shape[-1]          # already padded to a multiple of 128
    n_t = Tp // tile_t
    return pl.pallas_call(
        _head_kernel,
        out_shape=jax.ShapeDtypeStruct((B, Tp, Cout), jnp.float32),
        grid=(B, n_t),
        in_specs=[pl.BlockSpec((1, tile_t, C), lambda bb, t: (bb, t, 0)),
                  _param_spec(g.shape), _param_spec(b.shape),
                  _param_spec(w.shape), _param_spec(bias.shape)],
        out_specs=pl.BlockSpec((1, tile_t, Cout), lambda bb, t: (bb, t, 0)),
        compiler_params=_compiler_params(),
        cost_estimate=pl.CostEstimate(
            flops=2 * B * Tp * C * Cout,
            transcendentals=0,
            bytes_accessed=B * Tp * (C * 2 + Cout * 4) + C * Cout * 2),
    )(h, g, b, w, bias)


# ------------------------------- iSTFT glue ---------------------------------


def istft(real, imag, n_fft, hop):
    # real/imag: (B, T_frames, F) with F = n_fft//2 + 1; torch.istft semantics
    # (hann window, periodic, center=True, normalized=False).
    B, Tf, _ = real.shape
    S = real.astype(jnp.complex64) + 1j * imag.astype(jnp.complex64)
    frames = jnp.fft.irfft(S, n=n_fft, axis=-1)                 # (B, Tf, n_fft)
    n = jnp.arange(n_fft)
    win = 0.5 * (1.0 - jnp.cos(2.0 * jnp.pi * n / n_fft))       # periodic hann
    frames = frames * win[None, None, :]
    out_len = n_fft + hop * (Tf - 1)
    idx = (jnp.arange(Tf)[:, None] * hop + jnp.arange(n_fft)[None, :]).reshape(-1)
    y = jnp.zeros((B, out_len), jnp.float32).at[:, idx].add(
        frames.reshape(B, -1).astype(jnp.float32))
    env = jnp.zeros((out_len,), jnp.float32).at[idx].add(
        jnp.tile(win.astype(jnp.float32) ** 2, Tf))
    # window-envelope floor instead of torch's hard NOLA check (equivalent in
    # the valid region for hann with hop <= n_fft/2).
    y = y / jnp.where(env > 1e-11, env, 1.0)
    return y[:, n_fft // 2: out_len - n_fft // 2]


# ------------------------------ model wrapper -------------------------------


def _round_up(n, m):
    return ((n + m - 1) // m) * m


def _choose_tile_t(T, B, max_tile_t):
    tile = max(TILE_ALIGN, min(_round_up(max_tile_t, TILE_ALIGN),
                               _round_up(T, TILE_ALIGN)))
    # v7x has 2 TensorCores; keep >= 2 programs on the ("parallel","parallel")
    # grid so both get work.
    while B * ((T + tile - 1) // tile) < 2 and tile > TILE_ALIGN:
        tile = max(TILE_ALIGN, _round_up(tile // 2, TILE_ALIGN))
    return tile


def init_params(key, in_channel, channel, h_channel, out_channel, num_layers):
    cin_p = _round_up(in_channel, LANE)       # lane-dense im2col columns
    cout_p = _round_up(out_channel, LANE)     # lane-dense head output
    ks = jax.random.split(key, 4 + num_layers)
    std = 0.02
    # in_conv: torch weight is (Cout, Cin, K).  To load a real checkpoint:
    #   w = torch_w.transpose(2, 1, 0)          # -> (K, Cin, Cout)
    #   w = zero-pad Cin -> cin_p, reshape(K * cin_p, Cout)
    # Row index = k * cin_p + cin, matching the k-major column concat in
    # _in_conv_ln_kernel.
    w_in = std * jax.random.normal(ks[0], (K, in_channel, channel), jnp.float32)
    w_in = jnp.pad(w_in, ((0, 0), (0, cin_p - in_channel), (0, 0)))
    # out_conv: torch weight (Cout, C, 1) -> (C, Cout), zero-pad Cout -> cout_p.
    w_out = std * jax.random.normal(ks[1], (channel, out_channel), jnp.float32)
    w_out = jnp.pad(w_out, ((0, 0), (0, cout_p - out_channel)))
    p = {
        "in_w": w_in.reshape(K * cin_p, channel).astype(jnp.bfloat16),
        "in_b": jnp.zeros((1, channel), jnp.float32),
        "norm_g": jnp.ones((1, channel), jnp.float32),
        "norm_b": jnp.zeros((1, channel), jnp.float32),
        "last_g": jnp.ones((1, channel), jnp.float32),
        "last_b": jnp.zeros((1, channel), jnp.float32),
        "out_w": w_out.astype(jnp.bfloat16),
        "out_b": jnp.zeros((1, cout_p), jnp.float32),
        "layers": [],
    }
    for l in range(num_layers):
        k0, k1, k2 = jax.random.split(ks[4 + l], 3)
        p["layers"].append({
            # depthwise torch weight (C, 1, 7) -> (7, C), f32 (VPU path)
            "dw_w": std * jax.random.normal(k0, (K, channel), jnp.float32),
            "dw_b": jnp.zeros((1, channel), jnp.float32),
            "ln_g": jnp.ones((1, channel), jnp.float32),
            "ln_b": jnp.zeros((1, channel), jnp.float32),
            # pw_conv1 torch (H, C) -> (C, H); pw_conv2 torch (C, H) -> (H, C)
            "w1": (std * jax.random.normal(k1, (channel, h_channel),
                                           jnp.float32)).astype(jnp.bfloat16),
            "b1": jnp.zeros((1, h_channel), jnp.float32),
            "w2": (std * jax.random.normal(k2, (h_channel, channel),
                                           jnp.float32)).astype(jnp.bfloat16),
            "b2": jnp.zeros((1, channel), jnp.float32),
            "scale": jnp.full((1, channel), 1.0 / num_layers, jnp.float32),
        })
    return p


def vocos_forward(x_bct, params, n_fft, hop, *, max_tile_t=512):
    # x_bct: (B, C_in, T0) — PyTorch NCL convention at the boundary.
    # ReflectionPad1d([1, 0]): prepend x[..., 1]
    x = jnp.concatenate([x_bct[:, :, 1:2], x_bct], axis=2)        # (B, Cin, T)
    B, Cin, T = x.shape
    cin_p = params["in_w"].shape[0] // K
    tile_t = _choose_tile_t(T, B, max_tile_t)
    Tp = _round_up(T, tile_t)
    x = jnp.transpose(x, (0, 2, 1)).astype(ACT_DTYPE)             # (B, T, Cin)
    x = jnp.pad(x, ((0, 0), (0, Tp - T), (0, cin_p - Cin)))       # once, at entry

    # fused in_conv (im2col matmul) + LayerNorm (bf16 activation out)
    h = in_conv_ln_call(x, params["in_w"], params["in_b"],
                        params["norm_g"], params["norm_b"],
                        t_valid=T, tile_t=tile_t)

    # ConvNeXt backbone: one fused kernel per layer, bf16 HBM round trips.
    for lp in params["layers"]:
        h = convnext_call(h, lp, t_valid=T, tile_t=tile_t)

    # head: LayerNorm + 1x1 conv (lane-dense, 128-padded output); the pad
    # columns and rows >= T are sliced off here, split/exp/cos/sin outside.
    y = head_call(h, params["last_g"], params["last_b"],
                  params["out_w"], params["out_b"], tile_t=tile_t)
    F = n_fft // 2 + 1
    y = y[:, :T, :2 * F]
    mag = jnp.minimum(jnp.exp(y[..., :F]), 100.0)
    phase = y[..., F:]
    o = istft(mag * jnp.cos(phase), mag * jnp.sin(phase), n_fft, hop)  # (B, L)
    return o[:, None, :]                                               # (B, 1, L)


# ---------------------------------- main -------------------------------------


if __name__ == "__main__":
    B, in_channel, T0 = 2, 4, 8
    channel, h_channel, num_layers = 32, 64, 2
    n_fft, hop = 16, 4
    out_channel = 2 * (n_fft // 2 + 1)   # mag + phase bins = 18

    key = jax.random.PRNGKey(0)
    kx, kp = jax.random.split(key)
    x = jax.random.normal(kx, (B, in_channel, T0), jnp.float32)
    params = init_params(kp, in_channel, channel, h_channel, out_channel,
                         num_layers)

    fwd = jax.jit(functools.partial(vocos_forward, n_fft=n_fft, hop=hop))
    out = fwd(x, params)
    jax.block_until_ready(out)
    assert out.shape == (B, 1, hop * T0), out.shape
    print("KERNEL_OK")
</pallas_src>

<mosaic_0001>
module attributes {stable_mosaic.version = 11 : i64} {
  func.func private @main(%arg0: i32) attributes {dimension_semantics = [#tpu.dimension_semantics<core_parallel>], iteration_bounds = array<i64: 2>, tpu.core_type = #tpu.core_type<sc_scalar_subcore>, window_params = []} {
    return
  }
}

module attributes {stable_mosaic.version = 11 : i64} {
  func.func private @main(%arg0: i32) attributes {dimension_semantics = [#tpu.dimension_semantics<core_parallel>], iteration_bounds = array<i64: 2>, tpu.core_type = #tpu.core_type<sc_scalar_subcore>, window_params = []} {
    return
  }
}

module attributes {stable_mosaic.version = 11 : i64} {
  func.func @_head_kernel(%arg0: i32, %arg1: i32, %arg2: memref<1x16x32xbf16, #tpu.memory_space<vmem>>, %arg3: memref<1x32xf32, #tpu.memory_space<vmem>>, %arg4: memref<1x32xf32, #tpu.memory_space<vmem>>, %arg5: memref<32x128xbf16, #tpu.memory_space<vmem>>, %arg6: memref<1x128xf32, #tpu.memory_space<vmem>>, %arg7: memref<1x16x128xf32, #tpu.memory_space<vmem>>) attributes {dimension_semantics = [#tpu.dimension_semantics<parallel>, #tpu.dimension_semantics<parallel>], iteration_bounds = array<i64: 2, 1>, scalar_prefetch = 0 : i64, scratch_operands = 0 : i64, tpu.core_type = #tpu.core_type<tc>, window_params = [{transform_indices = @transform_0, window_bounds = array<i64: 1, 16, 32>}, {pipeline_mode = #tpu.pipeline_mode<synchronous>, transform_indices = @transform_1, window_bounds = array<i64: 1, 32>}, {pipeline_mode = #tpu.pipeline_mode<synchronous>, transform_indices = @transform_2, window_bounds = array<i64: 1, 32>}, {pipeline_mode = #tpu.pipeline_mode<synchronous>, transform_indices = @transform_3, window_bounds = array<i64: 32, 128>}, {pipeline_mode = #tpu.pipeline_mode<synchronous>, transform_indices = @transform_4, window_bounds = array<i64: 1, 128>}, {transform_indices = @transform_5, window_bounds = array<i64: 1, 16, 128>}]} {
    %c0 = arith.constant 0 : index
    %c0_0 = arith.constant 0 : index
    %c0_1 = arith.constant 0 : index
    %0 = vector.load %arg2[%c0, %c0_0, %c0_1] : memref<1x16x32xbf16, #tpu.memory_space<vmem>>, vector<1x16x32xbf16>
    %1 = vector.shape_cast %0 : vector<1x16x32xbf16> to vector<16x32xbf16>
    %2 = arith.extf %1 : vector<16x32xbf16> to vector<16x32xf32>
    %c0_2 = arith.constant 0 : index
    %c0_3 = arith.constant 0 : index
    %3 = vector.load %arg3[%c0_2, %c0_3] : memref<1x32xf32, #tpu.memory_space<vmem>>, vector<1x32xf32>
    %c0_4 = arith.constant 0 : index
    %c0_5 = arith.constant 0 : index
    %4 = vector.load %arg4[%c0_4, %c0_5] : memref<1x32xf32, #tpu.memory_space<vmem>>, vector<1x32xf32>
    %cst = arith.constant dense<0.000000e+00> : vector<16xf32>
    %5 = vector.multi_reduction <add>, %2, %cst [1] : vector<16x32xf32> to vector<16xf32>
    %6 = vector.shape_cast %5 : vector<16xf32> to vector<16x1xf32>
    %cst_6 = arith.constant 3.200000e+01 : f32
    %7 = vector.broadcast %cst_6 : f32 to vector<16x1xf32>
    %8 = arith.divf %6, %7 : vector<16x1xf32>
    %9 = arith.mulf %2, %2 : vector<16x32xf32>
    %cst_7 = arith.constant dense<0.000000e+00> : vector<16xf32>
    %10 = vector.multi_reduction <add>, %9, %cst_7 [1] : vector<16x32xf32> to vector<16xf32>
    %11 = vector.shape_cast %10 : vector<16xf32> to vector<16x1xf32>
    %cst_8 = arith.constant 3.200000e+01 : f32
    %12 = vector.broadcast %cst_8 : f32 to vector<16x1xf32>
    %13 = arith.divf %11, %12 : vector<16x1xf32>
    %14 = arith.mulf %8, %8 : vector<16x1xf32>
    %15 = arith.subf %13, %14 : vector<16x1xf32>
    %16 = vector.broadcast %8 : vector<16x1xf32> to vector<16x32xf32>
    %17 = arith.subf %2, %16 : vector<16x32xf32>
    %cst_9 = arith.constant 9.99999974E-6 : f32
    %18 = vector.broadcast %cst_9 : f32 to vector<16x1xf32>
    %19 = arith.addf %15, %18 : vector<16x1xf32>
    %20 = math.rsqrt %19 : vector<16x1xf32>
    %21 = vector.broadcast %20 : vector<16x1xf32> to vector<16x32xf32>
    %22 = arith.mulf %17, %21 : vector<16x32xf32>
    %23 = vector.broadcast %3 : vector<1x32xf32> to vector<16x32xf32>
    %24 = arith.mulf %22, %23 : vector<16x32xf32>
    %25 = vector.broadcast %4 : vector<1x32xf32> to vector<16x32xf32>
    %26 = arith.addf %24, %25 : vector<16x32xf32>
    %27 = arith.truncf %26 : vector<16x32xf32> to vector<16x32xbf16>
    %c0_10 = arith.constant 0 : index
    %c0_11 = arith.constant 0 : index
    %28 = vector.load %arg5[%c0_10, %c0_11] : memref<32x128xbf16, #tpu.memory_space<vmem>>, vector<32x128xbf16>
    %cst_12 = arith.constant dense<0.000000e+00> : vector<16x128xf32>
    %29 = tpu.matmul %27, %28, %cst_12 {dimension_numbers = #tpu.dot_dimension_numbers<[1], [0], [0], [1], [0, 0, 1, 1], [], []>} : vector<16x32xbf16>, vector<32x128xbf16>, vector<16x128xf32> -> vector<16x128xf32>
    %c0_13 = arith.constant 0 : index
    %c0_14 = arith.constant 0 : index
    %30 = vector.load %arg6[%c0_13, %c0_14] : memref<1x128xf32, #tpu.memory_space<vmem>>, vector<1x128xf32>
    %31 = vector.broadcast %30 : vector<1x128xf32> to vector<16x128xf32>
    %32 = arith.addf %29, %31 : vector<16x128xf32>
    %c0_15 = arith.constant 0 : index
    %c0_16 = arith.constant 0 : index
    %c0_17 = arith.constant 0 : index
    %33 = vector.load %arg7[%c0_15, %c0_16, %c0_17] : memref<1x16x128xf32, #tpu.memory_space<vmem>>, vector<1x16x128xf32>
    %34 = vector.shape_cast %33 : vector<1x16x128xf32> to vector<16x128xf32>
    %35 = vector.shape_cast %32 : vector<16x128xf32> to vector<1x16x128xf32>
    tpu.vector_store %arg7[%c0_15, %c0_16, %c0_17], %35 {strides = array<i32>} : memref<1x16x128xf32, #tpu.memory_space<vmem>>, vector<1x16x128xf32>,
    return
  }
  func.func @transform_0(%arg0: i32, %arg1: i32) -> (i32, i32, i32) {
    %c0_i32 = arith.constant 0 : i32
    %c0_i32_0 = arith.constant 0 : i32
    return %arg0, %arg1, %c0_i32 : i32, i32, i32
  }
  func.func @transform_1(%arg0: i32, %arg1: i32) -> (i32, i32) {
    %c0_i32 = arith.constant 0 : i32
    %c0_i32_0 = arith.constant 0 : i32
    %c0_i32_1 = arith.constant 0 : i32
    return %c0_i32, %c0_i32_0 : i32, i32
  }
  func.func @transform_2(%arg0: i32, %arg1: i32) -> (i32, i32) {
    %c0_i32 = arith.constant 0 : i32
    %c0_i32_0 = arith.constant 0 : i32
    %c0_i32_1 = arith.constant 0 : i32
    return %c0_i32, %c0_i32_0 : i32, i32
  }
  func.func @transform_3(%arg0: i32, %arg1: i32) -> (i32, i32) {
    %c0_i32 = arith.constant 0 : i32
    %c0_i32_0 = arith.constant 0 : i32
    %c0_i32_1 = arith.constant 0 : i32
    return %c0_i32, %c0_i32_0 : i32, i32
  }
  func.func @transform_4(%arg0: i32, %arg1: i32) -> (i32, i32) {
    %c0_i32 = arith.constant 0 : i32
    %c0_i32_0 = arith.constant 0 : i32
    %c0_i32_1 = arith.constant 0 : i32
    return %c0_i32, %c0_i32_0 : i32, i32
  }
  func.func @transform_5(%arg0: i32, %arg1: i32) -> (i32, i32, i32) {
    %c0_i32 = arith.constant 0 : i32
    %c0_i32_0 = arith.constant 0 : i32
    return %arg0, %arg1, %c0_i32 : i32, i32, i32
  }
}

module attributes {stable_mosaic.version = 11 : i64} {
  func.func @_convnext_kernel(%arg0: i32, %arg1: i32, %arg2: memref<1x16x32xbf16, #tpu.memory_space<vmem>>, %arg3: memref<1x16x32xbf16, #tpu.memory_space<vmem>>, %arg4: memref<1x16x32xbf16, #tpu.memory_space<vmem>>, %arg5: memref<7x32xf32, #tpu.memory_space<vmem>>, %arg6: memref<1x32xf32, #tpu.memory_space<vmem>>, %arg7: memref<1x32xf32, #tpu.memory_space<vmem>>, %arg8: memref<1x32xf32, #tpu.memory_space<vmem>>, %arg9: memref<32x64xbf16, #tpu.memory_space<vmem>>, %arg10: memref<1x64xf32, #tpu.memory_space<vmem>>, %arg11: memref<64x32xbf16, #tpu.memory_space<vmem>>, %arg12: memref<1x32xf32, #tpu.memory_space<vmem>>, %arg13: memref<1x32xf32, #tpu.memory_space<vmem>>, %arg14: memref<1x16x32xbf16, #tpu.memory_space<vmem>>) attributes {dimension_semantics = [#tpu.dimension_semantics<parallel>, #tpu.dimension_semantics<parallel>], iteration_bounds = array<i64: 2, 1>, scalar_prefetch = 0 : i64, scratch_operands = 0 : i64, tpu.core_type = #tpu.core_type<tc>, window_params = [{transform_indices = @transform_0, window_bounds = array<i64: 1, 16, 32>}, {transform_indices = @transform_1, window_bounds = array<i64: 1, 16, 32>}, {transform_indices = @transform_2, window_bounds = array<i64: 1, 16, 32>}, {pipeline_mode = #tpu.pipeline_mode<synchronous>, transform_indices = @transform_3, window_bounds = array<i64: 7, 32>}, {pipeline_mode = #tpu.pipeline_mode<synchronous>, transform_indices = @transform_4, window_bounds = array<i64: 1, 32>}, {pipeline_mode = #tpu.pipeline_mode<synchronous>, transform_indices = @transform_5, window_bounds = array<i64: 1, 32>}, {pipeline_mode = #tpu.pipeline_mode<synchronous>, transform_indices = @transform_6, window_bounds = array<i64: 1, 32>}, {pipeline_mode = #tpu.pipeline_mode<synchronous>, transform_indices = @transform_7, window_bounds = array<i64: 32, 64>}, {pipeline_mode = #tpu.pipeline_mode<synchronous>, transform_indices = @transform_8, window_bounds = array<i64: 1, 64>}, {pipeline_mode = #tpu.pipeline_mode<synchronous>, transform_indices = @transform_9, window_bounds = array<i64: 64, 32>}, {pipeline_mode = #tpu.pipeline_mode<synchronous>, transform_indices = @transform_10, window_bounds = array<i64: 1, 32>}, {pipeline_mode = #tpu.pipeline_mode<synchronous>, transform_indices = @transform_11, window_bounds = array<i64: 1, 32>}, {transform_indices = @transform_12, window_bounds = array<i64: 1, 16, 32>}]} {
    %c0 = arith.constant 0 : index
    %c0_0 = arith.constant 0 : index
    %c0_1 = arith.constant 0 : index
    %0 = vector.load %arg2[%c0, %c0_0, %c0_1] : memref<1x16x32xbf16, #tpu.memory_space<vmem>>, vector<1x16x32xbf16>
    %1 = vector.shape_cast %0 : vector<1x16x32xbf16> to vector<16x32xbf16>
    %c0_2 = arith.constant 0 : index
    %c0_3 = arith.constant 0 : index
    %c0_4 = arith.constant 0 : index
    %2 = vector.load %arg3[%c0_2, %c0_3, %c0_4] : memref<1x16x32xbf16, #tpu.memory_space<vmem>>, vector<1x16x32xbf16>
    %3 = vector.shape_cast %2 : vector<1x16x32xbf16> to vector<16x32xbf16>
    %c0_5 = arith.constant 0 : index
    %c0_6 = arith.constant 0 : index
    %c0_7 = arith.constant 0 : index
    %4 = vector.load %arg4[%c0_5, %c0_6, %c0_7] : memref<1x16x32xbf16, #tpu.memory_space<vmem>>, vector<1x16x32xbf16>
    %5 = vector.shape_cast %4 : vector<1x16x32xbf16> to vector<16x32xbf16>
    %c0_i32 = arith.constant 0 : i32
    %6 = arith.cmpi eq, %arg1, %c0_i32 : i32
    %cst = arith.constant 0.000000e+00 : bf16
    %7 = vector.broadcast %cst : bf16 to vector<16x32xbf16>
    %8 = arith.select %6, %7, %3 : vector<16x32xbf16>
    %c0_i32_8 = arith.constant 0 : i32
    %9 = arith.cmpi eq, %arg1, %c0_i32_8 : i32
    %cst_9 = arith.constant 0.000000e+00 : bf16
    %10 = vector.broadcast %cst_9 : bf16 to vector<16x32xbf16>
    %11 = arith.select %9, %10, %5 : vector<16x32xbf16>
    %12 = tpu.concatenate %8, %1, %11 in 0 : vector<16x32xbf16>, vector<16x32xbf16>, vector<16x32xbf16> -> vector<48x32xbf16>
    %13 = arith.extf %12 : vector<48x32xbf16> to vector<48x32xf32>
    %14 = vector.extract_strided_slice %13 {offsets = [16, 0], sizes = [16, 32], strides = [1, 1]} : vector<48x32xf32> to vector<16x32xf32>
    %c0_10 = arith.constant 0 : index
    %c0_11 = arith.constant 0 : index
    %15 = vector.load %arg5[%c0_10, %c0_11] : memref<7x32xf32, #tpu.memory_space<vmem>>, vector<7x32xf32>
    %cst_12 = arith.constant 0.000000e+00 : f32
    %16 = vector.broadcast %cst_12 : f32 to vector<16x32xf32>
    %c0_13 = arith.constant 0 : index
    %c0_14 = arith.constant 0 : index
    %17 = vector.load %arg6[%c0_13, %c0_14] : memref<1x32xf32, #tpu.memory_space<vmem>>, vector<1x32xf32>
    %18 = vector.broadcast %17 : vector<1x32xf32> to vector<16x32xf32>
    %19 = arith.addf %16, %18 : vector<16x32xf32>
    %c35_i32 = arith.constant 35 : i32
    %20 = tpu.dynamic_rotate %13 by %c35_i32 dim 0 : vector<48x32xf32>, i32 -> vector<48x32xf32>
    %21 = vector.extract_strided_slice %20 {offsets = [0, 0], sizes = [16, 32], strides = [1, 1]} : vector<48x32xf32> to vector<16x32xf32>
    %c47_i32 = arith.constant 47 : i32
    %22 = tpu.dynamic_rotate %20 by %c47_i32 dim 0 : vector<48x32xf32>, i32 -> vector<48x32xf32>
    %23 = vector.extract_strided_slice %22 {offsets = [0, 0], sizes = [16, 32], strides = [1, 1]} : vector<48x32xf32> to vector<16x32xf32>
    %c47_i32_15 = arith.constant 47 : i32
    %24 = tpu.dynamic_rotate %22 by %c47_i32_15 dim 0 : vector<48x32xf32>, i32 -> vector<48x32xf32>
    %25 = vector.extract_strided_slice %24 {offsets = [0, 0], sizes = [16, 32], strides = [1, 1]} : vector<48x32xf32> to vector<16x32xf32>
    %c47_i32_16 = arith.constant 47 : i32
    %26 = tpu.dynamic_rotate %24 by %c47_i32_16 dim 0 : vector<48x32xf32>, i32 -> vector<48x32xf32>
    %27 = vector.extract_strided_slice %26 {offsets = [0, 0], sizes = [16, 32], strides = [1, 1]} : vector<48x32xf32> to vector<16x32xf32>
    %c47_i32_17 = arith.constant 47 : i32
    %28 = tpu.dynamic_rotate %26 by %c47_i32_17 dim 0 : vector<48x32xf32>, i32 -> vector<48x32xf32>
    %29 = vector.extract_strided_slice %28 {offsets = [0, 0], sizes = [16, 32], strides = [1, 1]} : vector<48x32xf32> to vector<16x32xf32>
    %c47_i32_18 = arith.constant 47 : i32
    %30 = tpu.dynamic_rotate %28 by %c47_i32_18 dim 0 : vector<48x32xf32>, i32 -> vector<48x32xf32>
    %31 = vector.extract_strided_slice %30 {offsets = [0, 0], sizes = [16, 32], strides = [1, 1]} : vector<48x32xf32> to vector<16x32xf32>
    %c47_i32_19 = arith.constant 47 : i32
    %32 = tpu.dynamic_rotate %30 by %c47_i32_19 dim 0 : vector<48x32xf32>, i32 -> vector<48x32xf32>
    %33 = vector.extract_strided_slice %32 {offsets = [0, 0], sizes = [16, 32], strides = [1, 1]} : vector<48x32xf32> to vector<16x32xf32>
    %34 = vector.extract_strided_slice %15 {offsets = [0, 0], sizes = [1, 32], strides = [1, 1]} : vector<7x32xf32> to vector<1x32xf32>
    %35 = vector.broadcast %34 : vector<1x32xf32> to vector<16x32xf32>
    %36 = arith.mulf %21, %35 : vector<16x32xf32>
    %37 = arith.addf %19, %36 : vector<16x32xf32>
    %38 = vector.extract_strided_slice %15 {offsets = [1, 0], sizes = [1, 32], strides = [1, 1]} : vector<7x32xf32> to vector<1x32xf32>
    %39 = vector.broadcast %38 : vector<1x32xf32> to vector<16x32xf32>
    %40 = arith.mulf %23, %39 : vector<16x32xf32>
    %41 = arith.addf %37, %40 : vector<16x32xf32>
    %42 = vector.extract_strided_slice %15 {offsets = [2, 0], sizes = [1, 32], strides = [1, 1]} : vector<7x32xf32> to vector<1x32xf32>
    %43 = vector.broadcast %42 : vector<1x32xf32> to vector<16x32xf32>
    %44 = arith.mulf %25, %43 : vector<16x32xf32>
    %45 = arith.addf %41, %44 : vector<16x32xf32>
    %46 = vector.extract_strided_slice %15 {offsets = [3, 0], sizes = [1, 32], strides = [1, 1]} : vector<7x32xf32> to vector<1x32xf32>
    %47 = vector.broadcast %46 : vector<1x32xf32> to vector<16x32xf32>
    %48 = arith.mulf %27, %47 : vector<16x32xf32>
    %49 = arith.addf %45, %48 : vector<16x32xf32>
    %50 = vector.extract_strided_slice %15 {offsets = [4, 0], sizes = [1, 32], strides = [1, 1]} : vector<7x32xf32> to vector<1x32xf32>
    %51 = vector.broadcast %50 : vector<1x32xf32> to vector<16x32xf32>
    %52 = arith.mulf %29, %51 : vector<16x32xf32>
    %53 = arith.addf %49, %52 : vector<16x32xf32>
    %54 = vector.extract_strided_slice %15 {offsets = [5, 0], sizes = [1, 32], strides = [1, 1]} : vector<7x32xf32> to vector<1x32xf32>
    %55 = vector.broadcast %54 : vector<1x32xf32> to vector<16x32xf32>
    %56 = arith.mulf %31, %55 : vector<16x32xf32>
    %57 = arith.addf %53, %56 : vector<16x32xf32>
    %58 = vector.extract_strided_slice %15 {offsets = [6, 0], sizes = [1, 32], strides = [1, 1]} : vector<7x32xf32> to vector<1x32xf32>
    %59 = vector.broadcast %58 : vector<1x32xf32> to vector<16x32xf32>
    %60 = arith.mulf %33, %59 : vector<16x32xf32>
    %61 = arith.addf %57, %60 : vector<16x32xf32>
    %c0_20 = arith.constant 0 : index
    %c0_21 = arith.constant 0 : index
    %62 = vector.load %arg7[%c0_20, %c0_21] : memref<1x32xf32, #tpu.memory_space<vmem>>, vector<1x32xf32>
    %c0_22 = arith.constant 0 : index
    %c0_23 = arith.constant 0 : index
    %63 = vector.load %arg8[%c0_22, %c0_23] : memref<1x32xf32, #tpu.memory_space<vmem>>, vector<1x32xf32>
    %cst_24 = arith.constant dense<0.000000e+00> : vector<16xf32>
    %64 = vector.multi_reduction <add>, %61, %cst_24 [1] : vector<16x32xf32> to vector<16xf32>
    %65 = vector.shape_cast %64 : vector<16xf32> to vector<16x1xf32>
    %cst_25 = arith.constant 3.200000e+01 : f32
    %66 = vector.broadcast %cst_25 : f32 to vector<16x1xf32>
    %67 = arith.divf %65, %66 : vector<16x1xf32>
    %68 = arith.mulf %61, %61 : vector<16x32xf32>
    %cst_26 = arith.constant dense<0.000000e+00> : vector<16xf32>
    %69 = vector.multi_reduction <add>, %68, %cst_26 [1] : vector<16x32xf32> to vector<16xf32>
    %70 = vector.shape_cast %69 : vector<16xf32> to vector<16x1xf32>
    %cst_27 = arith.constant 3.200000e+01 : f32
    %71 = vector.broadcast %cst_27 : f32 to vector<16x1xf32>
    %72 = arith.divf %70, %71 : vector<16x1xf32>
    %73 = arith.mulf %67, %67 : vector<16x1xf32>
    %74 = arith.subf %72, %73 : vector<16x1xf32>
    %75 = vector.broadcast %67 : vector<16x1xf32> to vector<16x32xf32>
    %76 = arith.subf %61, %75 : vector<16x32xf32>
    %cst_28 = arith.constant 9.99999974E-6 : f32
    %77 = vector.broadcast %cst_28 : f32 to vector<16x1xf32>
    %78 = arith.addf %74, %77 : vector<16x1xf32>
    %79 = math.rsqrt %78 : vector<16x1xf32>
    %80 = vector.broadcast %79 : vector<16x1xf32> to vector<16x32xf32>
    %81 = arith.mulf %76, %80 : vector<16x32xf32>
    %82 = vector.broadcast %62 : vector<1x32xf32> to vector<16x32xf32>
    %83 = arith.mulf %81, %82 : vector<16x32xf32>
    %84 = vector.broadcast %63 : vector<1x32xf32> to vector<16x32xf32>
    %85 = arith.addf %83, %84 : vector<16x32xf32>
    %86 = arith.truncf %85 : vector<16x32xf32> to vector<16x32xbf16>
    %c0_29 = arith.constant 0 : index
    %c0_30 = arith.constant 0 : index
    %87 = vector.load %arg9[%c0_29, %c0_30] : memref<32x64xbf16, #tpu.memory_space<vmem>>, vector<32x64xbf16>
    %cst_31 = arith.constant dense<0.000000e+00> : vector<16x64xf32>
    %88 = tpu.matmul %86, %87, %cst_31 {dimension_numbers = #tpu.dot_dimension_numbers<[1], [0], [0], [1], [0, 0, 1, 1], [], []>} : vector<16x32xbf16>, vector<32x64xbf16>, vector<16x64xf32> -> vector<16x64xf32>
    %c0_32 = arith.constant 0 : index
    %c0_33 = arith.constant 0 : index
    %89 = vector.load %arg10[%c0_32, %c0_33] : memref<1x64xf32, #tpu.memory_space<vmem>>, vector<1x64xf32>
    %90 = vector.broadcast %89 : vector<1x64xf32> to vector<16x64xf32>
    %91 = arith.addf %88, %90 : vector<16x64xf32>
    %92 = arith.mulf %91, %91 : vector<16x64xf32>
    %93 = arith.mulf %91, %92 : vector<16x64xf32>
    %cst_34 = arith.constant 4.471500e-02 : f32
    %94 = vector.broadcast %cst_34 : f32 to vector<16x64xf32>
    %95 = arith.mulf %94, %93 : vector<16x64xf32>
    %96 = arith.addf %91, %95 : vector<16x64xf32>
    %cst_35 = arith.constant 0.797884583 : f32
    %97 = vector.broadcast %cst_35 : f32 to vector<16x64xf32>
    %98 = arith.mulf %97, %96 : vector<16x64xf32>
    %99 = math.tanh %98 : vector<16x64xf32>
    %cst_36 = arith.constant 1.000000e+00 : f32
    %100 = vector.broadcast %cst_36 : f32 to vector<16x64xf32>
    %101 = arith.addf %100, %99 : vector<16x64xf32>
    %cst_37 = arith.constant 5.000000e-01 : f32
    %102 = vector.broadcast %cst_37 : f32 to vector<16x64xf32>
    %103 = arith.mulf %102, %101 : vector<16x64xf32>
    %104 = arith.mulf %91, %103 : vector<16x64xf32>
    %105 = arith.truncf %104 : vector<16x64xf32> to vector<16x64xbf16>
    %c0_38 = arith.constant 0 : index
    %c0_39 = arith.constant 0 : index
    %106 = vector.load %arg11[%c0_38, %c0_39] : memref<64x32xbf16, #tpu.memory_space<vmem>>, vector<64x32xbf16>
    %cst_40 = arith.constant dense<0.000000e+00> : vector<16x32xf32>
    %107 = tpu.matmul %105, %106, %cst_40 {dimension_numbers = #tpu.dot_dimension_numbers<[1], [0], [0], [1], [0, 0, 1, 1], [], []>} : vector<16x64xbf16>, vector<64x32xbf16>, vector<16x32xf32> -> vector<16x32xf32>
    %c0_41 = arith.constant 0 : index
    %c0_42 = arith.constant 0 : index
    %108 = vector.load %arg12[%c0_41, %c0_42] : memref<1x32xf32, #tpu.memory_space<vmem>>, vector<1x32xf32>
    %109 = vector.broadcast %108 : vector<1x32xf32> to vector<16x32xf32>
    %110 = arith.addf %107, %109 : vector<16x32xf32>
    %c0_43 = arith.constant 0 : index
    %c0_44 = arith.constant 0 : index
    %111 = vector.load %arg13[%c0_43, %c0_44] : memref<1x32xf32, #tpu.memory_space<vmem>>, vector<1x32xf32>
    %112 = vector.broadcast %111 : vector<1x32xf32> to vector<16x32xf32>
    %113 = arith.mulf %112, %110 : vector<16x32xf32>
    %114 = arith.addf %14, %113 : vector<16x32xf32>
    %c16_i32 = arith.constant 16 : i32
    %115 = arith.muli %arg1, %c16_i32 : i32
    %c16_i32_45 = arith.constant 16 : i32
    %116 = arith.addi %115, %c16_i32_45 : i32
    %c9_i32 = arith.constant 9 : i32
    %117 = arith.cmpi sgt, %116, %c9_i32 : i32
    %118 = arith.extui %117 : i1 to i32
    %c0_i32_46 = arith.constant 0 : i32
    %119 = arith.cmpi ne, %118, %c0_i32_46 : i32
    scf.if %119 {
      %123 = tpu.iota {dimensions = array<i32: 0>} : vector<16x1xi32>
      %124 = vector.broadcast %115 : i32 to vector<16x1xi32>
      %125 = arith.addi %124, %123 : vector<16x1xi32>
      %c9_i32_48 = arith.constant 9 : i32
      %126 = vector.broadcast %c9_i32_48 : i32 to vector<16x1xi32>
      %127 = arith.cmpi slt, %125, %126 : vector<16x1xi32>
      %cst_49 = arith.constant 0.000000e+00 : f32
      %128 = vector.shape_cast %127 : vector<16x1xi1> to vector<16x1xi1>
      %129 = vector.broadcast %128 : vector<16x1xi1> to vector<16x32xi1>
      %130 = vector.broadcast %cst_49 : f32 to vector<16x32xf32>
      %131 = arith.select %129, %114, %130 : vector<16x32xi1>, vector<16x32xf32>
      %132 = arith.truncf %131 : vector<16x32xf32> to vector<16x32xbf16>
      %c0_50 = arith.constant 0 : index
      %c0_51 = arith.constant 0 : index
      %c0_52 = arith.constant 0 : index
      %133 = vector.load %arg14[%c0_50, %c0_51, %c0_52] : memref<1x16x32xbf16, #tpu.memory_space<vmem>>, vector<1x16x32xbf16>
      %134 = vector.shape_cast %133 : vector<1x16x32xbf16> to vector<16x32xbf16>
      %135 = vector.shape_cast %132 : vector<16x32xbf16> to vector<1x16x32xbf16>
      tpu.vector_store %arg14[%c0_50, %c0_51, %c0_52], %135 {strides = array<i32>} : memref<1x16x32xbf16, #tpu.memory_space<vmem>>, vector<1x16x32xbf16>,
    } else {
    }
    %true = arith.constant true
    %120 = arith.xori %117, %true : i1
    %121 = arith.extui %120 : i1 to i32
    %c0_i32_47 = arith.constant 0 : i32
    %122 = arith.cmpi ne, %121, %c0_i32_47 : i32
    scf.if %122 {
      %123 = arith.truncf %114 : vector<16x32xf32> to vector<16x32xbf16>
      %c0_48 = arith.constant 0 : index
      %c0_49 = arith.constant 0 : index
      %c0_50 = arith.constant 0 : index
      %124 = vector.load %arg14[%c0_48, %c0_49, %c0_50] : memref<1x16x32xbf16, #tpu.memory_space<vmem>>, vector<1x16x32xbf16>
      %125 = vector.shape_cast %124 : vector<1x16x32xbf16> to vector<16x32xbf16>
      %126 = vector.shape_cast %123 : vector<16x32xbf16> to vector<1x16x32xbf16>
      tpu.vector_store %arg14[%c0_48, %c0_49, %c0_50], %126 {strides = array<i32>} : memref<1x16x32xbf16, #tpu.memory_space<vmem>>, vector<1x16x32xbf16>,
    } else {
    }
    return
  }
  func.func @transform_0(%arg0: i32, %arg1: i32) -> (i32, i32, i32) {
    %c0_i32 = arith.constant 0 : i32
    %c0_i32_0 = arith.constant 0 : i32
    return %arg0, %arg1, %c0_i32 : i32, i32, i32
  }
  func.func @transform_1(%arg0: i32, %arg1: i32) -> (i32, i32, i32) {
    %c1_i32 = arith.constant 1 : i32
    %0 = arith.muli %arg1, %c1_i32 : i32
    %c1_i32_0 = arith.constant 1 : i32
    %1 = arith.subi %0, %c1_i32_0 : i32
    %c0_i32 = arith.constant 0 : i32
    %2 = arith.maxsi %1, %c0_i32 : i32
    %c0_i32_1 = arith.constant 0 : i32
    %c0_i32_2 = arith.constant 0 : i32
    return %arg0, %2, %c0_i32_1 : i32, i32, i32
  }
  func.func @transform_2(%arg0: i32, %arg1: i32) -> (i32, i32, i32) {
    %c1_i32 = arith.constant 1 : i32
    %0 = arith.addi %arg1, %c1_i32 : i32
    %c1_i32_0 = arith.constant 1 : i32
    %1 = arith.muli %0, %c1_i32_0 : i32
    %c0_i32 = arith.constant 0 : i32
    %2 = arith.minsi %1, %c0_i32 : i32
    %c0_i32_1 = arith.constant 0 : i32
    %c0_i32_2 = arith.constant 0 : i32
    return %arg0, %2, %c0_i32_1 : i32, i32, i32
  }
  func.func @transform_3(%arg0: i32, %arg1: i32) -> (i32, i32) {
    %c0_i32 = arith.constant 0 : i32
    %c0_i32_0 = arith.constant 0 : i32
    %c0_i32_1 = arith.constant 0 : i32
    return %c0_i32, %c0_i32_0 : i32, i32
  }
  func.func @transform_4(%arg0: i32, %arg1: i32) -> (i32, i32) {
    %c0_i32 = arith.constant 0 : i32
    %c0_i32_0 = arith.constant 0 : i32
    %c0_i32_1 = arith.constant 0 : i32
    return %c0_i32, %c0_i32_0 : i32, i32
  }
  func.func @transform_5(%arg0: i32, %arg1: i32) -> (i32, i32) {
    %c0_i32 = arith.constant 0 : i32
    %c0_i32_0 = arith.constant 0 : i32
    %c0_i32_1 = arith.constant 0 : i32
    return %c0_i32, %c0_i32_0 : i32, i32
  }
  func.func @transform_6(%arg0: i32, %arg1: i32) -> (i32, i32) {
    %c0_i32 = arith.constant 0 : i32
    %c0_i32_0 = arith.constant 0 : i32
    %c0_i32_1 = arith.constant 0 : i32
    return %c0_i32, %c0_i32_0 : i32, i32
  }
  func.func @transform_7(%arg0: i32, %arg1: i32) -> (i32, i32) {
    %c0_i32 = arith.constant 0 : i32
    %c0_i32_0 = arith.constant 0 : i32
    %c0_i32_1 = arith.constant 0 : i32
    return %c0_i32, %c0_i32_0 : i32, i32
  }
  func.func @transform_8(%arg0: i32, %arg1: i32) -> (i32, i32) {
    %c0_i32 = arith.constant 0 : i32
    %c0_i32_0 = arith.constant 0 : i32
    %c0_i32_1 = arith.constant 0 : i32
    return %c0_i32, %c0_i32_0 : i32, i32
  }
  func.func @transform_9(%arg0: i32, %arg1: i32) -> (i32, i32) {
    %c0_i32 = arith.constant 0 : i32
    %c0_i32_0 = arith.constant 0 : i32
    %c0_i32_1 = arith.constant 0 : i32
    return %c0_i32, %c0_i32_0 : i32, i32
  }
  func.func @transform_10(%arg0: i32, %arg1: i32) -> (i32, i32) {
    %c0_i32 = arith.constant 0 : i32
    %c0_i32_0 = arith.constant 0 : i32
    %c0_i32_1 = arith.constant 0 : i32
    return %c0_i32, %c0_i32_0 : i32, i32
  }
  func.func @transform_11(%arg0: i32, %arg1: i32) -> (i32, i32) {
    %c0_i32 = arith.constant 0 : i32
    %c0_i32_0 = arith.constant 0 : i32
    %c0_i32_1 = arith.constant 0 : i32
    return %c0_i32, %c0_i32_0 : i32, i32
  }
  func.func @transform_12(%arg0: i32, %arg1: i32) -> (i32, i32, i32) {
    %c0_i32 = arith.constant 0 : i32
    %c0_i32_0 = arith.constant 0 : i32
    return %arg0, %arg1, %c0_i32 : i32, i32, i32
  }
}

module attributes {stable_mosaic.version = 11 : i64} {
  func.func @_in_conv_ln_kernel(%arg0: i32, %arg1: i32, %arg2: memref<1x16x128xbf16, #tpu.memory_space<vmem>>, %arg3: memref<1x16x128xbf16, #tpu.memory_space<vmem>>, %arg4: memref<1x16x128xbf16, #tpu.memory_space<vmem>>, %arg5: memref<896x32xbf16, #tpu.memory_space<vmem>>, %arg6: memref<1x32xf32, #tpu.memory_space<vmem>>, %arg7: memref<1x32xf32, #tpu.memory_space<vmem>>, %arg8: memref<1x32xf32, #tpu.memory_space<vmem>>, %arg9: memref<1x16x32xbf16, #tpu.memory_space<vmem>>) attributes {dimension_semantics = [#tpu.dimension_semantics<parallel>, #tpu.dimension_semantics<parallel>], iteration_bounds = array<i64: 2, 1>, scalar_prefetch = 0 : i64, scratch_operands = 0 : i64, tpu.core_type = #tpu.core_type<tc>, window_params = [{transform_indices = @transform_0, window_bounds = array<i64: 1, 16, 128>}, {transform_indices = @transform_1, window_bounds = array<i64: 1, 16, 128>}, {transform_indices = @transform_2, window_bounds = array<i64: 1, 16, 128>}, {pipeline_mode = #tpu.pipeline_mode<synchronous>, transform_indices = @transform_3, window_bounds = array<i64: 896, 32>}, {pipeline_mode = #tpu.pipeline_mode<synchronous>, transform_indices = @transform_4, window_bounds = array<i64: 1, 32>}, {pipeline_mode = #tpu.pipeline_mode<synchronous>, transform_indices = @transform_5, window_bounds = array<i64: 1, 32>}, {pipeline_mode = #tpu.pipeline_mode<synchronous>, transform_indices = @transform_6, window_bounds = array<i64: 1, 32>}, {transform_indices = @transform_7, window_bounds = array<i64: 1, 16, 32>}]} {
    %c0 = arith.constant 0 : index
    %c0_0 = arith.constant 0 : index
    %c0_1 = arith.constant 0 : index
    %0 = vector.load %arg2[%c0, %c0_0, %c0_1] : memref<1x16x128xbf16, #tpu.memory_space<vmem>>, vector<1x16x128xbf16>
    %1 = vector.shape_cast %0 : vector<1x16x128xbf16> to vector<16x128xbf16>
    %c0_2 = arith.constant 0 : index
    %c0_3 = arith.constant 0 : index
    %c0_4 = arith.constant 0 : index
    %2 = vector.load %arg3[%c0_2, %c0_3, %c0_4] : memref<1x16x128xbf16, #tpu.memory_space<vmem>>, vector<1x16x128xbf16>
    %3 = vector.shape_cast %2 : vector<1x16x128xbf16> to vector<16x128xbf16>
    %c0_5 = arith.constant 0 : index
    %c0_6 = arith.constant 0 : index
    %c0_7 = arith.constant 0 : index
    %4 = vector.load %arg4[%c0_5, %c0_6, %c0_7] : memref<1x16x128xbf16, #tpu.memory_space<vmem>>, vector<1x16x128xbf16>
    %5 = vector.shape_cast %4 : vector<1x16x128xbf16> to vector<16x128xbf16>
    %c0_i32 = arith.constant 0 : i32
    %6 = arith.cmpi eq, %arg1, %c0_i32 : i32
    %cst = arith.constant 0.000000e+00 : bf16
    %7 = vector.broadcast %cst : bf16 to vector<16x128xbf16>
    %8 = arith.select %6, %7, %3 : vector<16x128xbf16>
    %c0_i32_8 = arith.constant 0 : i32
    %9 = arith.cmpi eq, %arg1, %c0_i32_8 : i32
    %cst_9 = arith.constant 0.000000e+00 : bf16
    %10 = vector.broadcast %cst_9 : bf16 to vector<16x128xbf16>
    %11 = arith.select %9, %10, %5 : vector<16x128xbf16>
    %12 = tpu.concatenate %8, %1, %11 in 0 : vector<16x128xbf16>, vector<16x128xbf16>, vector<16x128xbf16> -> vector<48x128xbf16>
    %13 = arith.extf %12 : vector<48x128xbf16> to vector<48x128xf32>
    %c35_i32 = arith.constant 35 : i32
    %14 = tpu.dynamic_rotate %13 by %c35_i32 dim 0 : vector<48x128xf32>, i32 -> vector<48x128xf32>
    %15 = vector.extract_strided_slice %14 {offsets = [0, 0], sizes = [16, 128], strides = [1, 1]} : vector<48x128xf32> to vector<16x128xf32>
    %c47_i32 = arith.constant 47 : i32
    %16 = tpu.dynamic_rotate %14 by %c47_i32 dim 0 : vector<48x128xf32>, i32 -> vector<48x128xf32>
    %17 = vector.extract_strided_slice %16 {offsets = [0, 0], sizes = [16, 128], strides = [1, 1]} : vector<48x128xf32> to vector<16x128xf32>
    %c47_i32_10 = arith.constant 47 : i32
    %18 = tpu.dynamic_rotate %16 by %c47_i32_10 dim 0 : vector<48x128xf32>, i32 -> vector<48x128xf32>
    %19 = vector.extract_strided_slice %18 {offsets = [0, 0], sizes = [16, 128], strides = [1, 1]} : vector<48x128xf32> to vector<16x128xf32>
    %c47_i32_11 = arith.constant 47 : i32
    %20 = tpu.dynamic_rotate %18 by %c47_i32_11 dim 0 : vector<48x128xf32>, i32 -> vector<48x128xf32>
    %21 = vector.extract_strided_slice %20 {offsets = [0, 0], sizes = [16, 128], strides = [1, 1]} : vector<48x128xf32> to vector<16x128xf32>
    %c47_i32_12 = arith.constant 47 : i32
    %22 = tpu.dynamic_rotate %20 by %c47_i32_12 dim 0 : vector<48x128xf32>, i32 -> vector<48x128xf32>
    %23 = vector.extract_strided_slice %22 {offsets = [0, 0], sizes = [16, 128], strides = [1, 1]} : vector<48x128xf32> to vector<16x128xf32>
    %c47_i32_13 = arith.constant 47 : i32
    %24 = tpu.dynamic_rotate %22 by %c47_i32_13 dim 0 : vector<48x128xf32>, i32 -> vector<48x128xf32>
    %25 = vector.extract_strided_slice %24 {offsets = [0, 0], sizes = [16, 128], strides = [1, 1]} : vector<48x128xf32> to vector<16x128xf32>
    %c47_i32_14 = arith.constant 47 : i32
    %26 = tpu.dynamic_rotate %24 by %c47_i32_14 dim 0 : vector<48x128xf32>, i32 -> vector<48x128xf32>
    %27 = vector.extract_strided_slice %26 {offsets = [0, 0], sizes = [16, 128], strides = [1, 1]} : vector<48x128xf32> to vector<16x128xf32>
    %28 = tpu.concatenate %15, %17, %19, %21, %23, %25, %27 in 1 : vector<16x128xf32>, vector<16x128xf32>, vector<16x128xf32>, vector<16x128xf32>, vector<16x128xf32>, vector<16x128xf32>, vector<16x128xf32> -> vector<16x896xf32>
    %29 = arith.truncf %28 : vector<16x896xf32> to vector<16x896xbf16>
    %c0_15 = arith.constant 0 : index
    %c0_16 = arith.constant 0 : index
    %30 = vector.load %arg5[%c0_15, %c0_16] : memref<896x32xbf16, #tpu.memory_space<vmem>>, vector<896x32xbf16>
    %cst_17 = arith.constant dense<0.000000e+00> : vector<16x32xf32>
    %31 = tpu.matmul %29, %30, %cst_17 {dimension_numbers = #tpu.dot_dimension_numbers<[1], [0], [0], [1], [0, 0, 1, 1], [], []>} : vector<16x896xbf16>, vector<896x32xbf16>, vector<16x32xf32> -> vector<16x32xf32>
    %c0_18 = arith.constant 0 : index
    %c0_19 = arith.constant 0 : index
    %32 = vector.load %arg6[%c0_18, %c0_19] : memref<1x32xf32, #tpu.memory_space<vmem>>, vector<1x32xf32>
    %33 = vector.broadcast %32 : vector<1x32xf32> to vector<16x32xf32>
    %34 = arith.addf %31, %33 : vector<16x32xf32>
    %c0_20 = arith.constant 0 : index
    %c0_21 = arith.constant 0 : index
    %35 = vector.load %arg7[%c0_20, %c0_21] : memref<1x32xf32, #tpu.memory_space<vmem>>, vector<1x32xf32>
    %c0_22 = arith.constant 0 : index
    %c0_23 = arith.constant 0 : index
    %36 = vector.load %arg8[%c0_22, %c0_23] : memref<1x32xf32, #tpu.memory_space<vmem>>, vector<1x32xf32>
    %cst_24 = arith.constant dense<0.000000e+00> : vector<16xf32>
    %37 = vector.multi_reduction <add>, %34, %cst_24 [1] : vector<16x32xf32> to vector<16xf32>
    %38 = vector.shape_cast %37 : vector<16xf32> to vector<16x1xf32>
    %cst_25 = arith.constant 3.200000e+01 : f32
    %39 = vector.broadcast %cst_25 : f32 to vector<16x1xf32>
    %40 = arith.divf %38, %39 : vector<16x1xf32>
    %41 = arith.mulf %34, %34 : vector<16x32xf32>
    %cst_26 = arith.constant dense<0.000000e+00> : vector<16xf32>
    %42 = vector.multi_reduction <add>, %41, %cst_26 [1] : vector<16x32xf32> to vector<16xf32>
    %43 = vector.shape_cast %42 : vector<16xf32> to vector<16x1xf32>
    %cst_27 = arith.constant 3.200000e+01 : f32
    %44 = vector.broadcast %cst_27 : f32 to vector<16x1xf32>
    %45 = arith.divf %43, %44 : vector<16x1xf32>
    %46 = arith.mulf %40, %40 : vector<16x1xf32>
    %47 = arith.subf %45, %46 : vector<16x1xf32>
    %48 = vector.broadcast %40 : vector<16x1xf32> to vector<16x32xf32>
    %49 = arith.subf %34, %48 : vector<16x32xf32>
    %cst_28 = arith.constant 9.99999974E-6 : f32
    %50 = vector.broadcast %cst_28 : f32 to vector<16x1xf32>
    %51 = arith.addf %47, %50 : vector<16x1xf32>
    %52 = math.rsqrt %51 : vector<16x1xf32>
    %53 = vector.broadcast %52 : vector<16x1xf32> to vector<16x32xf32>
    %54 = arith.mulf %49, %53 : vector<16x32xf32>
    %55 = vector.broadcast %35 : vector<1x32xf32> to vector<16x32xf32>
    %56 = arith.mulf %54, %55 : vector<16x32xf32>
    %57 = vector.broadcast %36 : vector<1x32xf32> to vector<16x32xf32>
    %58 = arith.addf %56, %57 : vector<16x32xf32>
    %c16_i32 = arith.constant 16 : i32
    %59 = arith.muli %arg1, %c16_i32 : i32
    %c16_i32_29 = arith.constant 16 : i32
    %60 = arith.addi %59, %c16_i32_29 : i32
    %c9_i32 = arith.constant 9 : i32
    %61 = arith.cmpi sgt, %60, %c9_i32 : i32
    %62 = arith.extui %61 : i1 to i32
    %c0_i32_30 = arith.constant 0 : i32
    %63 = arith.cmpi ne, %62, %c0_i32_30 : i32
    scf.if %63 {
      %67 = tpu.iota {dimensions = array<i32: 0>} : vector<16x1xi32>
      %68 = vector.broadcast %59 : i32 to vector<16x1xi32>
      %69 = arith.addi %68, %67 : vector<16x1xi32>
      %c9_i32_32 = arith.constant 9 : i32
      %70 = vector.broadcast %c9_i32_32 : i32 to vector<16x1xi32>
      %71 = arith.cmpi slt, %69, %70 : vector<16x1xi32>
      %cst_33 = arith.constant 0.000000e+00 : f32
      %72 = vector.shape_cast %71 : vector<16x1xi1> to vector<16x1xi1>
      %73 = vector.broadcast %72 : vector<16x1xi1> to vector<16x32xi1>
      %74 = vector.broadcast %cst_33 : f32 to vector<16x32xf32>
      %75 = arith.select %73, %58, %74 : vector<16x32xi1>, vector<16x32xf32>
      %76 = arith.truncf %75 : vector<16x32xf32> to vector<16x32xbf16>
      %c0_34 = arith.constant 0 : index
      %c0_35 = arith.constant 0 : index
      %c0_36 = arith.constant 0 : index
      %77 = vector.load %arg9[%c0_34, %c0_35, %c0_36] : memref<1x16x32xbf16, #tpu.memory_space<vmem>>, vector<1x16x32xbf16>
      %78 = vector.shape_cast %77 : vector<1x16x32xbf16> to vector<16x32xbf16>
      %79 = vector.shape_cast %76 : vector<16x32xbf16> to vector<1x16x32xbf16>
      tpu.vector_store %arg9[%c0_34, %c0_35, %c0_36], %79 {strides = array<i32>} : memref<1x16x32xbf16, #tpu.memory_space<vmem>>, vector<1x16x32xbf16>,
    } else {
    }
    %true = arith.constant true
    %64 = arith.xori %61, %true : i1
    %65 = arith.extui %64 : i1 to i32
    %c0_i32_31 = arith.constant 0 : i32
    %66 = arith.cmpi ne, %65, %c0_i32_31 : i32
    scf.if %66 {
      %67 = arith.truncf %58 : vector<16x32xf32> to vector<16x32xbf16>
      %c0_32 = arith.constant 0 : index
      %c0_33 = arith.constant 0 : index
      %c0_34 = arith.constant 0 : index
      %68 = vector.load %arg9[%c0_32, %c0_33, %c0_34] : memref<1x16x32xbf16, #tpu.memory_space<vmem>>, vector<1x16x32xbf16>
      %69 = vector.shape_cast %68 : vector<1x16x32xbf16> to vector<16x32xbf16>
      %70 = vector.shape_cast %67 : vector<16x32xbf16> to vector<1x16x32xbf16>
      tpu.vector_store %arg9[%c0_32, %c0_33, %c0_34], %70 {strides = array<i32>} : memref<1x16x32xbf16, #tpu.memory_space<vmem>>, vector<1x16x32xbf16>,
    } else {
    }
    return
  }
  func.func @transform_0(%arg0: i32, %arg1: i32) -> (i32, i32, i32) {
    %c0_i32 = arith.constant 0 : i32
    %c0_i32_0 = arith.constant 0 : i32
    return %arg0, %arg1, %c0_i32 : i32, i32, i32
  }
  func.func @transform_1(%arg0: i32, %arg1: i32) -> (i32, i32, i32) {
    %c1_i32 = arith.constant 1 : i32
    %0 = arith.muli %arg1, %c1_i32 : i32
    %c1_i32_0 = arith.constant 1 : i32
    %1 = arith.subi %0, %c1_i32_0 : i32
    %c0_i32 = arith.constant 0 : i32
    %2 = arith.maxsi %1, %c0_i32 : i32
    %c0_i32_1 = arith.constant 0 : i32
    %c0_i32_2 = arith.constant 0 : i32
    return %arg0, %2, %c0_i32_1 : i32, i32, i32
  }
  func.func @transform_2(%arg0: i32, %arg1: i32) -> (i32, i32, i32) {
    %c1_i32 = arith.constant 1 : i32
    %0 = arith.addi %arg1, %c1_i32 : i32
    %c1_i32_0 = arith.constant 1 : i32
    %1 = arith.muli %0, %c1_i32_0 : i32
    %c0_i32 = arith.constant 0 : i32
    %2 = arith.minsi %1, %c0_i32 : i32
    %c0_i32_1 = arith.constant 0 : i32
    %c0_i32_2 = arith.constant 0 : i32
    return %arg0, %2, %c0_i32_1 : i32, i32, i32
  }
  func.func @transform_3(%arg0: i32, %arg1: i32) -> (i32, i32) {
    %c0_i32 = arith.constant 0 : i32
    %c0_i32_0 = arith.constant 0 : i32
    %c0_i32_1 = arith.constant 0 : i32
    return %c0_i32, %c0_i32_0 : i32, i32
  }
  func.func @transform_4(%arg0: i32, %arg1: i32) -> (i32, i32) {
    %c0_i32 = arith.constant 0 : i32
    %c0_i32_0 = arith.constant 0 : i32
    %c0_i32_1 = arith.constant 0 : i32
    return %c0_i32, %c0_i32_0 : i32, i32
  }
  func.func @transform_5(%arg0: i32, %arg1: i32) -> (i32, i32) {
    %c0_i32 = arith.constant 0 : i32
    %c0_i32_0 = arith.constant 0 : i32
    %c0_i32_1 = arith.constant 0 : i32
    return %c0_i32, %c0_i32_0 : i32, i32
  }
  func.func @transform_6(%arg0: i32, %arg1: i32) -> (i32, i32) {
    %c0_i32 = arith.constant 0 : i32
    %c0_i32_0 = arith.constant 0 : i32
    %c0_i32_1 = arith.constant 0 : i32
    return %c0_i32, %c0_i32_0 : i32, i32
  }
  func.func @transform_7(%arg0: i32, %arg1: i32) -> (i32, i32, i32) {
    %c0_i32 = arith.constant 0 : i32
    %c0_i32_0 = arith.constant 0 : i32
    return %arg0, %arg1, %c0_i32 : i32, i32, i32
  }
}

</mosaic_0001>

<bundles_post_ra>
// kernel: reverse.0
= control target key start
LH: loop header
LB: loop body
LE: loop exit
PB: predicated region body
PF: predicated region fallthrough
CT: control target
= control target key end

     0   :  { %v2_v0 = vlaneseq  ;;  %s160_s0 = inlined_call_operand.vmem [shape: f32[2,9,7], index: 0, kind: input, shape index: {}]   ;;  %s161_s1 = inlined_call_operand.vmem [shape: f32[2,9,7], index: 1, kind: output, shape index: {}]  }
   0x1   :  { %v42_v2 = vld [vmem:[%s160_s0 + $0x10] sm:$0xff]  ;;  %v38_v3 = vld [vmem:[%s160_s0] sm:$0xff]  ;;  %v44_v4 = vld [vmem:[%s160_s0 + $0x18] sm:$0xff] }
   0x2   :  { %v3_v1 = vsub.s32 6, %v2_v0  ;;  %v40_v5 = vld [vmem:[%s160_s0 + $0x8] sm:$0xff] }
   0x4   :  { %4 = vset.pattern.permute.xlu0 %v3_v1  ;;  %125 = vset.pattern.permute.xlu1 %v3_v1 }
   0x5   :  { %62 = vperm.xlu1 %125, %v42_v2   ;;  %50 = vperm.xlu0 %4, %v38_v3  }
   0x9   :  { %68 = vperm.xlu1 %125, %v44_v4   ;;  %56 = vperm.xlu0 %4, %v40_v5  }
  0x84   :  { %v63_v6 = vpop.permute.xlu1 %62  ;;  %v51_v7 = vpop.permute.xlu0 %50 }
  0x85   :  { %109 = vst [vmem:[%s161_s1 + $0x10] sm:$0xff] %v63_v6  ;;  %105 = vst [vmem:[%s161_s1] sm:$0xff] %v51_v7 }
  0x88   :  { %v69_v8 = vpop.permute.xlu1 %68  ;;  %v57_v9 = vpop.permute.xlu0 %56 }
  0x89   :  { %111 = vst [vmem:[%s161_s1 + $0x18] sm:$0xff] %v69_v8  ;;  %107 = vst [vmem:[%s161_s1 + $0x8] sm:$0xff] %v57_v9 }

// kernel: vocos_forward.7
= control target key start
LH: loop header
LB: loop body
LE: loop exit
PB: predicated region body
PF: predicated region fallthrough
CT: control target
= control target key end

     0   :  { %s598_s18 = smov 0   ;;  %s600_s19 = smov 0   ;;  %s655_s0 = inlined_call_operand.vmem [shape: bf16[2,16,32], index: 0, kind: input, shape index: {}]   ;;  %s656_s1 = inlined_call_operand.vmem [shape: f32[1,32], index: 1, kind: input, shape index: {}]   ;;  %s657_s2 = inlined_call_operand.vmem [shape: f32[1,32], index: 2, kind: input, shape index: {}]   ;;  %s658_s3 = inlined_call_operand.vmem [shape: bf16[32,128], index: 3, kind: input, shape index: {}]   ;;  %s659_s4 = inlined_call_operand.vmem [shape: f32[1,128], index: 4, kind: input, shape index: {}]   ;;  %s660_s5 = inlined_call_operand.vmem [shape: f32[2,16,128], index: 5, kind: output, shape index: {}]  }
   0x1   :  { %s602_s20 = smov 0  }
   0x2 LB: > { %s27_s21 = sadd.s32 1, %s560_s19  ;;  %p480_p0 = scmp.ge.s32.totalorder %s564_s20, 1  ;;  %s564_s20 = sphi %s602_s20, %s15_s20   ;;  %s560_s19 = sphi %s600_s19, %s662_s19   ;;  %s556_s18 = sphi %s598_s18, %s661_s18  }
   0x3   : > { %p29_p1 = scmp.ge.s32.totalorder %s27_s21, 2  ;;  %p208_p2 = scmp.lt.s32.totalorder %s564_s20, 3 }
   0x5   : > { %s664_s21 = smov (%p29_p1, %s27_s21), 0  ;;  %p209_p3 = pnand %p480_p0, %p208_p2 }
   0x6   : > { %p245_p4 = scmp.lt.s32.totalorder (!%p209_p3), %s556_s18, 1  ;;  %vm271_vm0 = vcmask (!%p209_p3), 261120   ;;  %v536_v9 = vld [vmem:[%s658_s3] sm:$0xff] (!%p209_p3)   ;;  %v566_v10 = vmov (!%p209_p3), 0.0   ;;  %vm567_vm1 = vmmov (!%p209_p3), 0   ;;  %v537_v11 = vld [vmem:[%s658_s3 + $0x8] sm:$0xff] (!%p209_p3)  }
   0x7   : > { %212 = sbr.rel (%p209_p3) target bundleno = 411 (0x19b), region = 40  ;;  %502 = vmatprep.subr.bf16.mxu0 (!%p209_p3), %v566_v10  ;;  %506 = vmatprep.mubr.msk.bf16.mxu0 (!%p209_p3), %vm567_vm1, %v566_v10  ;;  %v485_v29 = vld [vmem:[%s656_s1] ss:$0 sm:$0xff] (!%p209_p3) }
   0x8   : > { %503 = vmatpush3.bf16.msra.mxu0 (!%p209_p3), %v536_v9  ;;  %v486_v34 = vld [vmem:[%s657_s2] ss:$0 sm:$0xff] (!%p209_p3) }
   0x9   : > { %504 = vmatprep.subr.bf16.mxu0 (!%p209_p3), %v566_v10  ;;  %v487_v39 = vld [vmem:[%s659_s4] ss:$0 sm:$0xff] (!%p209_p3) }
   0xc   : > { %505 = vmatpush3.bf16.msra.mxu0 (!%p209_p3), %v537_v11 }
   0xe   : > { %s666_s18 = smov (!%p245_p4, %s556_s18), 1 }
   0xf   : > { %s493_s22 = sshll.u32 %s666_s18, 3  ;;  %s494_s9 = sshll.u32 %s666_s18, 4 }
  0x10   : > { %s252_s25 = scalar_lea.vmem %s655_s0, %s493_s22  ;;  %s262_s14 = scalar_lea.vmem %s660_s5, %s494_s9 }
  0x11   : > { %v496_v0 = vld [vmem:[%s252_s25] sm:$0xff]  }
  0x12   : > { %v497_v1 = vunpack.c.l.bf16 %v496_v0  ;;  %v498_v2 = vunpack.c.h.bf16 %v496_v0 }
  0x14   : > { %v272_v3 = vsel %vm271_vm0, %v497_v1, 0.0  ;;  %v281_v4 = vmul.f32 %v497_v1, %v497_v1  ;;  %v282_v5 = vmul.f32 %v498_v2, %v498_v2  ;;  %v275_v7 = vsel %vm271_vm0, %v498_v2, 0.0 }
  0x15   : > { %273 = vadd.xlane.f32.xlu0 %v272_v3 }
  0x16   : > { %v283_v6 = vsel %vm271_vm0, %v281_v4, 0.0  ;;  %v286_v8 = vsel %vm271_vm0, %v282_v5, 0.0 }
  0x17   : > { %284 = vadd.xlane.f32.xlu1 %v283_v6 }
  0x19   : > { %276 = vadd.xlane.f32.xlu0 %v275_v7 }
  0x1b   : > { %287 = vadd.xlane.f32.xlu1 %v286_v8 }
  0xa2   : > { %v274_v12 = vpop.xlane.xlu0 %273 }
  0xa3   : > { %v279_v13 = vmul.f32 0.03125, %v274_v12 }
  0xa4   : > { %v285_v14 = vpop.xlane.xlu1 %284 }
  0xa5   : > { %v291_v15 = vmul.f32 %v279_v13, %v279_v13  ;;  %v289_v16 = vmul.f32 0.03125, %v285_v14  ;;  %v295_v26 = vsub.f32 %v497_v1, %v279_v13 }
  0xa6   : > { %v277_v17 = vpop.xlane.xlu0 %276 }
  0xa7   : > { %v293_v18 = vsub.f32 %v289_v16, %v291_v15  ;;  %v280_v19 = vmul.f32 0.03125, %v277_v17 }
  0xa8   : > { %v288_v20 = vpop.xlane.xlu1 %287 }
  0xa9   : > { %v297_v21 = vadd.f32 1e-05, %v293_v18  ;;  %v292_v22 = vmul.f32 %v280_v19, %v280_v19  ;;  %v290_v23 = vmul.f32 0.03125, %v288_v20  ;;  %v296_v30 = vsub.f32 %v498_v2, %v280_v19 }
  0xab   : > { %538 = vrsqrt.f32 %v297_v21  ;;  %v294_v24 = vsub.f32 %v290_v23, %v292_v22 }
  0xad   : > { %v298_v25 = vadd.f32 1e-05, %v294_v24 }
  0xaf   : > { %540 = vrsqrt.f32 %v298_v25 }
  0xb5   : > { %v539_v27 = vpop.eup %538 }
  0xb6   : > { %v301_v28 = vmul.f32 %v539_v27, %v295_v26 }
  0xb8   : > { %v309_v33 = vmul.f32 %v485_v29, %v301_v28 }
  0xb9   : > { %v541_v31 = vpop.eup %540 }
  0xba   : > { %v302_v32 = vmul.f32 %v541_v31, %v296_v30  ;;  %v317_v36 = vadd.f32 %v486_v34, %v309_v33 }
  0xbc   : > { %v310_v35 = vmul.f32 %v485_v29, %v302_v32 }
  0xbe   : > { %v318_v37 = vadd.f32 %v486_v34, %v310_v35 }
  0xc0   : > { %v319_v38 = vpack.c.bf16 %v318_v37, %v317_v36 }
  0xc2   : > { %507 = vmatmul.mubr.msk.bf16.vlgmr.msra.gmra.mrb[0].mxu0 %vm271_vm0, %v319_v38 }
 0x195   : > { %v380_v40 = vpop.f32.mrb[0].mxu0 }
 0x196   : > { %v381_v41 = vadd.f32 %v487_v39, %v380_v40  ;;  %v508_v42 = vpop.f32.mrb[1].mxu0 }
 0x197   : > { %v383_v43 = vpop.f32.mrb[2].mxu0 }
 0x198   : > { %387 = vst [vmem:[%s262_s14] sm:$0xff] %v381_v41  ;;  %v384_v44 = vadd.f32 %v487_v39, %v383_v43  ;;  %v509_v45 = vpop.f32.mrb[3].mxu0 }
 0x19a   : > { %388 = vst [vmem:[%s262_s14 + $0x8] sm:$0xff] %v384_v44 }
 0x19b PF: > { %s15_s20 = sadd.s32 1, %s564_s20   ;;  %s661_s18 = smov %s560_s19 }
 0x19c   : > { %p12_p5 = scmp.ge.s32.totalorder %s15_s20, 4   ;;  %s662_s19 = smov %s664_s21 }
 0x19e   :  { %14 = sbr.rel (!%p12_p5) target bundleno = 2 (0x2), region = 70 }

// kernel: vocos_forward.5
= control target key start
LH: loop header
LB: loop body
LE: loop exit
PB: predicated region body
PF: predicated region fallthrough
CT: control target
= control target key end

     0   :  { %s1348_s19 = smov 0   ;;  %s1350_s20 = smov 0   ;;  %s1538_s0 = inlined_call_operand.vmem [shape: bf16[2,16,32], index: 0, kind: input, shape index: {}, may-alias: {0,1,2}]   ;;  %s1539_s1 = inlined_call_operand.vmem [shape: bf16[2,16,32], index: 1, kind: input, shape index: {}, may-alias: {0,1,2}]   ;;  %s1540_s2 = inlined_call_operand.vmem [shape: bf16[2,16,32], index: 2, kind: input, shape index: {}, may-alias: {0,1,2}]   ;;  %s1541_s3 = inlined_call_operand.vmem [shape: f32[7,32], index: 3, kind: input, shape index: {}]   ;;  %s1542_s4 = inlined_call_operand.vmem [shape: f32[1,32], index: 4, kind: input, shape index: {}]   ;;  %s1543_s5 = inlined_call_operand.vmem [shape: f32[1,32], index: 5, kind: input, shape index: {}]   ;;  %s1544_s6 = inlined_call_operand.vmem [shape: f32[1,32], index: 6, kind: input, shape index: {}]   ;;  %s1545_s7 = inlined_call_operand.vmem [shape: bf16[32,64], index: 7, kind: input, shape index: {}]   ;;  %s1546_s8 = inlined_call_operand.vmem [shape: f32[1,64], index: 8, kind: input, shape index: {}]   ;;  %s1547_s9 = inlined_call_operand.vmem [shape: bf16[64,32], index: 9, kind: input, shape index: {}]   ;;  %s1548_s10 = inlined_call_operand.vmem [shape: f32[1,32], index: 10, kind: input, shape index: {}]   ;;  %s1549_s11 = inlined_call_operand.vmem [shape: f32[1,32], index: 11, kind: input, shape index: {}]   ;;  %s1550_s12 = inlined_call_operand.vmem [shape: bf16[2,16,32], index: 12, kind: output, shape index: {}]  }
   0x1   :  { %s1352_s21 = smov 0  }
   0x2 LB: > { %s34_s22 = sadd.s32 1, %s1274_s20  ;;  %p1146_p0 = scmp.ge.s32.totalorder %s1278_s21, 1  ;;  %s1278_s21 = sphi %s1352_s21, %s22_s21   ;;  %s1274_s20 = sphi %s1350_s20, %s1552_s20   ;;  %s1270_s19 = sphi %s1348_s19, %s1551_s19  }
   0x3   : > { %p36_p1 = scmp.ge.s32.totalorder %s34_s22, 2  ;;  %p441_p2 = scmp.lt.s32.totalorder %s1278_s21, 3 }
   0x5   : > { %s1554_s22 = smov (%p36_p1, %s34_s22), 0  ;;  %p442_p3 = pnand %p1146_p0, %p441_p2 }
   0x6   : > { %p516_p4 = scmp.lt.s32.totalorder (!%p442_p3), %s1270_s19, 1  ;;  %v621_v0 = vlaneseq (!%p442_p3)  ;;  %v1280_v1 = vmov (!%p442_p3), 0   ;;  %v606_v3 = vld [vmem:[%s1541_s3] sm:$0x7f] (!%p442_p3)  ;;  %vm745_vm2 = vcmask (!%p442_p3), 261120   ;;  %vm1282_vm3 = vmmov (!%p442_p3), 0  }
   0x7   : > { %445 = sbr.rel (%p442_p3) target bundleno = 689 (0x2b1), region = 68  ;;  %v1155_v2 = vcombine.low (!%p442_p3), %v1280_v1, %v1280_v1  ;;  %v1158_v42 = vld [vmem:[%s1542_s4] ss:$0 sm:$0xff] (!%p442_p3)  ;;  %vm919_vm4 = vcmask (!%p442_p3), 523264   ;;  %vm1001_vm5 = vcmask (!%p442_p3), 257024  }
   0x8   : > { %v1371_v4 = vshrl.u32 (!%p442_p3), %v621_v0, 7 }
   0x9   : > { %v600_v5 = vunpack.c.l.bf16 (!%p442_p3), %v1155_v2  ;;  %v601_v6 = vunpack.c.h.bf16 (!%p442_p3), %v1155_v2 }
   0xa   : > { %vm623_vm0 = vcmp.lt.s32.totalorder (!%p442_p3), %v1371_v4, 3  ;;  %vm636_vm1 = vcmp.lt.s32.totalorder (!%p442_p3), %v1371_v4, 7  ;;  %v689_v7 = vsub.s32 (!%p442_p3), 0, %v1371_v4  ;;  %v697_v8 = vsub.s32 (!%p442_p3), 1, %v1371_v4 }
   0xb   : > { %v615_v9 = vrot.slane (!%p442_p3), %v600_v5, 5  ;;  %v616_v10 = vrot.slane (!%p442_p3), %v601_v6, 5  ;;  %v705_v11 = vsub.s32 (!%p442_p3), 2, %v1371_v4  ;;  %v713_v12 = vsub.s32 (!%p442_p3), 3, %v1371_v4 }
   0xc   : > { %v721_v14 = vsub.s32 (!%p442_p3), 4, %v1371_v4  ;;  %v690_v17 = vrot.slane (!%p442_p3), %v606_v3, %v689_v7  ;;  %v698_v22 = vrot.slane (!%p442_p3), %v606_v3, %v697_v8  ;;  %v729_v24 = vsub.s32 (!%p442_p3), 5, %v1371_v4 }
   0xd   : > { %v624_v15 = vsel (!%p442_p3), %vm623_vm0, %v615_v9, %v616_v10  ;;  %v629_v16 = vsel (!%p442_p3), %vm623_vm0, %v616_v10, %v615_v9  ;;  %v1394_v23 = vrot.slane (!%p442_p3), %v606_v3, %v705_v11  ;;  %v737_v25 = vsub.s32 (!%p442_p3), 6, %v1371_v4 }
   0xe   : > { %s1556_s19 = smov (!%p516_p4, %s1270_s19), 1  ;;  %v633_v20 = vrot.slane %v624_v15, 1  ;;  %v634_v21 = vrot.slane %v629_v16, 1  ;;  %v1406_v32 = vrot.slane %v606_v3, %v713_v12  ;;  %v1408_v33 = vrot.slane %v606_v3, %v721_v14 }
   0xf   : > { %s1178_s25 = sshll.u32 %s1556_s19, 3  ;;  %v1416_v37 = vrot.slane %v606_v3, %v729_v24  ;;  %v1423_v45 = vrot.slane %v606_v3, %v737_v25 }
  0x10   : > { %s523_s28 = scalar_lea.vmem %s1538_s0, %s1178_s25  ;;  %v637_v28 = vsel %vm636_vm1, %v634_v21, %v633_v20  ;;  %v638_v29 = vsel %vm636_vm1, %v633_v20, %v634_v21  ;;  %s565_s24 = scalar_lea.vmem %s1550_s12, %s1178_s25 }
  0x11   : > { %v1385_v13 = vld [vmem:[%s523_s28] sm:$0xff]   ;;  %v646_v30 = vrot.slane %v638_v29, 1  ;;  %v647_v31 = vrot.slane %v637_v28, 1 }
  0x12   : > { %v602_v18 = vunpack.c.l.bf16 %v1385_v13  ;;  %v603_v19 = vunpack.c.h.bf16 %v1385_v13 }
  0x13   : > { %v650_v41 = vsel %vm636_vm1, %v646_v30, %v647_v31 }
  0x14   : > { %v617_v26 = vrot.slane %v602_v18, 5  ;;  %v618_v27 = vrot.slane %v603_v19, 5  ;;  %v658_v43 = vrot.slane %v650_v41, 1 }
  0x16   : > { %v625_v34 = vsel %vm623_vm0, %v618_v27, %v615_v9  ;;  %v626_v35 = vsel %vm623_vm0, %v617_v26, %v618_v27  ;;  %v627_v36 = vsel %vm623_vm0, %v616_v10, %v617_v26 }
  0x17   : > { %v630_v38 = vrot.slane %v627_v36, 1  ;;  %v631_v39 = vrot.slane %v626_v35, 1  ;;  %v632_v40 = vrot.slane %v625_v34, 1  ;;  %v691_v44 = vmul.f32 %v690_v17, %v627_v36 }
  0x18   : > { %v692_v46 = vmul.f32 %v690_v17, %v626_v35 }
  0x19   : > { %v639_v47 = vsel %vm636_vm1, %v632_v40, %v633_v20  ;;  %v640_v48 = vsel %vm636_vm1, %v631_v39, %v632_v40  ;;  %v641_v49 = vsel %vm636_vm1, %v630_v38, %v631_v39  ;;  %v642_v50 = vsel %vm636_vm1, %v633_v20, %v630_v38 }
  0x1a   : > { %v643_v51 = vrot.slane %v641_v49, 1  ;;  %v644_v52 = vrot.slane %v640_v48, 1  ;;  %v645_v53 = vrot.slane %v639_v47, 1  ;;  %v648_v54 = vrot.slane %v642_v50, 1 }
  0x1b   : > { %v693_v55 = vadd.f32 %v1158_v42, %v691_v44  ;;  %v699_v56 = vmul.f32 %v698_v22, %v641_v49  ;;  %v694_v57 = vadd.f32 %v1158_v42, %v692_v46  ;;  %v700_v58 = vmul.f32 %v698_v22, %v640_v48 }
  0x1c   : > { %v649_v59 = vsel %vm636_vm1, %v647_v31, %v648_v54  ;;  %v651_v60 = vsel %vm636_vm1, %v645_v53, %v646_v30  ;;  %v652_v61 = vsel %vm636_vm1, %v644_v52, %v645_v53  ;;  %v653_v62 = vsel %vm636_vm1, %v643_v51, %v644_v52 }
  0x1d   : > { %v654_v63 = vsel %vm636_vm1, %v648_v54, %v643_v51  ;;  %v655_v0 = vrot.slane %v653_v62, 1  ;;  %v656_v1 = vrot.slane %v652_v61, 1  ;;  %v657_v2 = vrot.slane %v651_v60, 1 }
  0x1e   : > { %v659_v3 = vrot.slane %v649_v59, 1  ;;  %v660_v5 = vrot.slane %v654_v63, 1  ;;  %v701_v6 = vadd.f32 %v699_v56, %v693_v55  ;;  %v707_v7 = vmul.f32 %v1394_v23, %v653_v62 }
  0x1f   : > { %v663_v8 = vsel %vm636_vm1, %v657_v2, %v658_v43  ;;  %v664_v9 = vsel %vm636_vm1, %v656_v1, %v657_v2  ;;  %v665_v10 = vsel %vm636_vm1, %v655_v0, %v656_v1  ;;  %v702_v11 = vadd.f32 %v700_v58, %v694_v57  ;;  %v1243_v1 = vld [vmem:[%s1545_s7 + $0x8] sm:$0xff]  }
  0x20   : > { %v662_v12 = vsel %vm636_vm1, %v658_v43, %v659_v3  ;;  %v666_v14 = vrot.slane %v665_v10, 1  ;;  %v667_v15 = vrot.slane %v664_v9, 1  ;;  %v668_v16 = vrot.slane %v663_v8, 1 }
  0x21   : > { %v669_v17 = vrot.slane %v662_v12, 1  ;;  %v709_v20 = vadd.f32 %v707_v7, %v701_v6  ;;  %v715_v21 = vmul.f32 %v1406_v32, %v665_v10  ;;  %v661_v22 = vsel %vm636_vm1, %v659_v3, %v660_v5 }
  0x22   : > { %v673_v24 = vsel %vm636_vm1, %v667_v15, %v668_v16  ;;  %v674_v25 = vsel %vm636_vm1, %v666_v14, %v667_v15  ;;  %v670_v26 = vrot.slane %v661_v22, 1  ;;  %v708_v27 = vmul.f32 %v1394_v23, %v652_v61 }
  0x23   : > { %v672_v28 = vsel %vm636_vm1, %v668_v16, %v669_v17  ;;  %v675_v29 = vrot.slane %v674_v25, 1  ;;  %v676_v30 = vrot.slane %v673_v24, 1  ;;  %v717_v31 = vadd.f32 %v715_v21, %v709_v20 }
  0x24   : > { %v677_v34 = vrot.slane %v672_v28, 1  ;;  %v723_v35 = vmul.f32 %v1408_v33, %v674_v25  ;;  %v671_v36 = vsel %vm636_vm1, %v669_v17, %v670_v26  ;;  %v710_v38 = vadd.f32 %v708_v27, %v702_v11 }
  0x25   : > { %v681_v39 = vsel %vm636_vm1, %v675_v29, %v676_v30  ;;  %v678_v40 = vrot.slane %v671_v36, 1  ;;  %v716_v41 = vmul.f32 %v1406_v32, %v664_v9  ;;  %v724_v23 = vmul.f32 %v1408_v33, %v673_v24  ;;  %v1159_v24 = vld [vmem:[%s1543_s5] ss:$0 sm:$0xff] }
  0x26   : > { %v680_v42 = vsel %vm636_vm1, %v676_v30, %v677_v34  ;;  %v682_v43 = vrot.slane %v681_v39, 1  ;;  %v725_v44 = vadd.f32 %v723_v35, %v717_v31  ;;  %v731_v46 = vmul.f32 %v1416_v37, %v681_v39  ;;  %v1160_v29 = vld [vmem:[%s1544_s6] ss:$0 sm:$0xff]  ;;  %v1246_v39 = vld [vmem:[%s1547_s9 + $0x10] sm:$0xff]  }
  0x27   : > { %v683_v47 = vrot.slane %v680_v42, 1  ;;  %v679_v48 = vsel %vm636_vm1, %v677_v34, %v678_v40  ;;  %v718_v49 = vadd.f32 %v716_v41, %v710_v38  ;;  %v732_v50 = vmul.f32 %v1416_v37, %v680_v42  ;;  %v1244_v36 = vld [vmem:[%s1547_s9] sm:$0xff]   ;;  %v1245_v38 = vld [vmem:[%s1547_s9 + $0x8] sm:$0xff]   ;;  %v1247_v40 = vld [vmem:[%s1547_s9 + $0x18] sm:$0xff]  }
  0x28   : > { %v733_v51 = vadd.f32 %v731_v46, %v725_v44  ;;  %v684_v52 = vrot.slane %v679_v48, 1  ;;  %v1281_v0 = vmov 0.0   ;;  %v1161_v41 = vld [vmem:[%s1546_s8] ss:$0 sm:$0xff] }
  0x29   : > { %v686_v32 = vsel %vm636_vm1, %v682_v43, %v683_v47  ;;  %v726_v33 = vadd.f32 %v724_v23, %v718_v49  ;;  %1194 = vmatprep.subr.bf16.mxu0 %v1281_v0  ;;  %1198 = vmatprep.mubr.msk.bf16.mxu0 %vm1282_vm3, %v1281_v0 }
  0x2a   : > { %v739_v53 = vmul.f32 %v1423_v45, %v686_v32  ;;  %v685_v54 = vsel %vm636_vm1, %v683_v47, %v684_v52  ;;  %1202 = vmatprep.subr.bf16.mxu1 %v1281_v0  ;;  %1210 = vmatprep.mubr.msk.bf16.mxu1 %vm1282_vm3, %v1281_v0 }
  0x2b   : > { %v734_v55 = vadd.f32 %v732_v50, %v726_v33  ;;  %v740_v56 = vmul.f32 %v1423_v45, %v685_v54  ;;  %v1242_v45 = vld [vmem:[%s1545_s7] sm:$0xff]   ;;  %1203 = vmatpush3.bf16.msra.mxu1 %v1244_v36 }
  0x2c   : > { %v741_v57 = vadd.f32 %v739_v53, %v733_v51  ;;  %1195 = vmatpush3.bf16.msra.mxu0 %v1242_v45  ;;  %1204 = vmatprep.subr.bf16.mxu1 %v1281_v0  ;;  %v1165_v45 = vld [vmem:[%s1548_s10] ss:$0 sm:$0xff] }
  0x2d   : > { %v742_v58 = vadd.f32 %v740_v56, %v734_v55  ;;  %1196 = vmatprep.subr.bf16.mxu0 %v1281_v0 }
  0x2e   : > { %v746_v59 = vsel %vm745_vm2, %v741_v57, 0.0  ;;  %v755_v37 = vmul.f32 %v741_v57, %v741_v57 }
  0x2f   : > { %747 = vadd.xlane.f32.xlu0 %v746_v59  ;;  %v756_v60 = vmul.f32 %v742_v58, %v742_v58  ;;  %v749_v62 = vsel %vm745_vm2, %v742_v58, 0.0  ;;  %1205 = vmatpush3.bf16.msra.mxu1 %v1245_v38 }
  0x30   : > { %v757_v61 = vsel %vm745_vm2, %v755_v37, 0.0  ;;  %1197 = vmatpush3.bf16.msra.mxu0 %v1243_v1  ;;  %1206 = vmatprep.subr.bf16.mxu1 %v1281_v0  ;;  %v1171_v1 = vld [vmem:[%s1549_s11] ss:$0 sm:$0xff] }
  0x31   : > { %758 = vadd.xlane.f32.xlu1 %v757_v61  ;;  %v760_v63 = vsel %vm745_vm2, %v756_v60, 0.0 }
  0x33   : > { %750 = vadd.xlane.f32.xlu0 %v749_v62  ;;  %1207 = vmatpush3.bf16.msra.mxu1 %v1246_v39 }
  0x34   : > { %1208 = vmatprep.subr.bf16.mxu1 %v1281_v0 }
  0x35   : > { %761 = vadd.xlane.f32.xlu1 %v760_v63 }
  0x37   : > { %1209 = vmatpush3.bf16.msra.mxu1 %v1247_v40 }
  0xbc   : > { %v748_v2 = vpop.xlane.xlu0 %747 }
  0xbd   : > { %v753_v3 = vmul.f32 0.03125, %v748_v2 }
  0xbe   : > { %v759_v5 = vpop.xlane.xlu1 %758 }
  0xbf   : > { %v765_v6 = vmul.f32 %v753_v3, %v753_v3  ;;  %v763_v7 = vmul.f32 0.03125, %v759_v5  ;;  %v769_v20 = vsub.f32 %v741_v57, %v753_v3 }
  0xc0   : > { %v751_v8 = vpop.xlane.xlu0 %750 }
  0xc1   : > { %v767_v9 = vsub.f32 %v763_v7, %v765_v6  ;;  %v754_v10 = vmul.f32 0.03125, %v751_v8  ;;  %v981_v6 = vadd.s32 8, %v1371_v4 }
  0xc2   : > { %v762_v11 = vpop.xlane.xlu1 %761 }
  0xc3   : > { %v771_v12 = vadd.f32 1e-05, %v767_v9  ;;  %v766_v14 = vmul.f32 %v754_v10, %v754_v10  ;;  %v764_v15 = vmul.f32 0.03125, %v762_v11  ;;  %v770_v25 = vsub.f32 %v742_v58, %v754_v10 }
  0xc4   : > { %vm986_vm6 = vcmp.lt.s32.totalorder %v981_v6, 9 }
  0xc5   : > { %1248 = vrsqrt.f32 %v771_v12  ;;  %v768_v16 = vsub.f32 %v764_v15, %v766_v14 }
  0xc7   : > { %v772_v17 = vadd.f32 1e-05, %v768_v16 }
  0xc9   : > { %1250 = vrsqrt.f32 %v772_v17 }
  0xcf   : > { %v1249_v21 = vpop.eup %1248 }
  0xd0   : > { %v775_v22 = vmul.f32 %v1249_v21, %v769_v20 }
  0xd2   : > { %v783_v28 = vmul.f32 %v1159_v24, %v775_v22 }
  0xd3   : > { %v1251_v26 = vpop.eup %1250 }
  0xd4   : > { %v776_v27 = vmul.f32 %v1251_v26, %v770_v25  ;;  %v791_v31 = vadd.f32 %v1160_v29, %v783_v28 }
  0xd6   : > { %v784_v30 = vmul.f32 %v1159_v24, %v776_v27 }
  0xd8   : > { %v792_v34 = vadd.f32 %v1160_v29, %v784_v30 }
  0xda   : > { %v793_v35 = vpack.c.bf16 %v792_v34, %v791_v31 }
  0xdc   : > { %1199 = vmatmul.mubr.msk.bf16.vlgmr.msra.gmra.mrb[0].mxu0 %vm745_vm2, %v793_v35 }
 0x1af   : > { %v854_v23 = vpop.f32.mrb[0].mxu0 }
 0x1b0   : > { %v855_v42 = vadd.f32 %v1161_v41, %v854_v23  ;;  %v1200_v43 = vpop.f32.mrb[1].mxu0 }
 0x1b1   : > { %v857_v44 = vpop.f32.mrb[2].mxu0 }
 0x1b2   : > { %v861_v46 = vmul.f32 %v855_v42, %v855_v42  ;;  %v858_v47 = vadd.f32 %v1161_v41, %v857_v44  ;;  %v1201_v48 = vpop.f32.mrb[3].mxu0 }
 0x1b4   : > { %v863_v49 = vmul.f32 %v861_v46, %v855_v42  ;;  %v862_v50 = vmul.f32 %v858_v47, %v858_v47 }
 0x1b6   : > { %v865_v51 = vmul.f32 0.044715, %v863_v49  ;;  %v864_v52 = vmul.f32 %v862_v50, %v858_v47 }
 0x1b8   : > { %v867_v32 = vadd.f32 %v865_v51, %v855_v42  ;;  %v866_v33 = vmul.f32 0.044715, %v864_v52 }
 0x1ba   : > { %v869_v53 = vmul.f32 0.7978846, %v867_v32  ;;  %v868_v54 = vadd.f32 %v866_v33, %v858_v47 }
 0x1bc   : > { %1252 = vtanh.f32 %v869_v53  ;;  %v870_v55 = vmul.f32 0.7978846, %v868_v54 }
 0x1be   : > { %1254 = vtanh.f32 %v870_v55 }
 0x1c6   : > { %v1253_v56 = vpop.eup %1252 }
 0x1c7   : > { %v873_v57 = vadd.f32 1.0, %v1253_v56 }
 0x1c8   : > { %v1255_v58 = vpop.eup %1254 }
 0x1c9   : > { %v875_v59 = vmul.f32 0.5, %v873_v57  ;;  %v874_v37 = vadd.f32 1.0, %v1255_v58 }
 0x1cb   : > { %v876_v60 = vmul.f32 0.5, %v874_v37  ;;  %v877_v61 = vmul.f32 %v875_v59, %v855_v42 }
 0x1cd   : > { %v878_v62 = vmul.f32 %v876_v60, %v858_v47 }
 0x1cf   : > { %v879_v63 = vpack.c.bf16 %v878_v62, %v877_v61 }
 0x1d1   : > { %1211 = vmatmul.mubr.msk.bf16.vlgmr.msra.gmra.mrb[0].mxu1 %vm919_vm4, %v879_v63 }
 0x2a4   : > { %v957_v0 = vpop.f32.mrb[0].mxu1 }
 0x2a5   : > { %v958_v2 = vadd.f32 %v1165_v45, %v957_v0  ;;  %v1212_v3 = vpop.f32.mrb[1].mxu1 }
 0x2a6   : > { %v960_v5 = vpop.f32.mrb[2].mxu1 }
 0x2a7   : > { %v971_v7 = vmul.f32 %v1171_v1, %v958_v2  ;;  %v961_v8 = vadd.f32 %v1165_v45, %v960_v5  ;;  %v1213_v9 = vpop.f32.mrb[3].mxu1 }
 0x2a9   : > { %v973_v10 = vadd.f32 %v971_v7, %v602_v18  ;;  %v972_v11 = vmul.f32 %v1171_v1, %v961_v8 }
 0x2ab   : > { %v1182_v12 = vpack.c.bf16 %v973_v10, %v973_v10  ;;  %v974_v14 = vadd.f32 %v972_v11, %v603_v19 }
 0x2ad   : > { %1002 = vst.msk [vmem:[%s565_s24] sm:$0xf] %vm1001_vm5, %v1182_v12  ;;  %v992_v4 = vsel %vm986_vm6, %v974_v14, 0.0 }
 0x2ae   : > { %v1183_v15 = vpack.c.bf16 %v992_v4, %v992_v4 }
 0x2b0   : > { %1003 = vst.msk [vmem:[%s565_s24 + $0x4] sm:$0xf] %vm1001_vm5, %v1183_v15 }
 0x2b1 PF: > { %s22_s21 = sadd.s32 1, %s1278_s21   ;;  %s1551_s19 = smov %s1274_s20 }
 0x2b2   : > { %p19_p5 = scmp.ge.s32.totalorder %s22_s21, 4   ;;  %s1552_s20 = smov %s1554_s22 }
 0x2b4   :  { %21 = sbr.rel (!%p19_p5) target bundleno = 2 (0x2), region = 112 }

// kernel: tile.8
= control target key start
LH: loop header
LB: loop body
LE: loop exit
PB: predicated region body
PF: predicated region fallthrough
CT: control target
= control target key end

     0   :  { %s28_s0 = inlined_call_operand.vmem [shape: f32[16], index: 0, kind: input, shape index: {}]   ;;  %s29_s1 = inlined_call_operand.vmem [shape: f32[9,16], index: 1, kind: output, shape index: {}]  }
   0x1   :  { %v4_v0 = vld [vmem:[%s28_s0] ss:$0 sm:$0xff] }
   0x2   :  { %5 = vst [vmem:[%s29_s1] sm:$0xff] %v4_v0  ;;  %8 = vst [vmem:[%s29_s1 + $0x8] sm:$0xff] %v4_v0 }

// kernel: vocos_forward.4
= control target key start
LH: loop header
LB: loop body
LE: loop exit
PB: predicated region body
PF: predicated region fallthrough
CT: control target
= control target key end

     0   :  { %s1725_s24 = smov 0   ;;  %s1727_s1 = smov 0   ;;  %s2030_s0 = inlined_call_operand.vmem [shape: bf16[2,16,128], index: 0, kind: input, shape index: {}, may-alias: {0,1,2}]   ;;  %s2031_s1 = inlined_call_operand.vmem [shape: bf16[2,16,128], index: 1, kind: input, shape index: {}, may-alias: {0,1,2}]   ;;  %s2032_s2 = inlined_call_operand.vmem [shape: bf16[2,16,128], index: 2, kind: input, shape index: {}, may-alias: {0,1,2}]   ;;  %s2033_s3 = inlined_call_operand.vmem [shape: bf16[896,32], index: 3, kind: input, shape index: {}]   ;;  %s2034_s4 = inlined_call_operand.vmem [shape: f32[1,32], index: 4, kind: input, shape index: {}]   ;;  %s2035_s5 = inlined_call_operand.vmem [shape: f32[1,32], index: 5, kind: input, shape index: {}]   ;;  %s2036_s6 = inlined_call_operand.vmem [shape: f32[1,32], index: 6, kind: input, shape index: {}]   ;;  %s2037_s7 = inlined_call_operand.vmem [shape: bf16[2,16,32], index: 7, kind: output, shape index: {}]  }
   0x1   :  { %s1729_s2 = smov 0  }
   0x2 LB: > { %s29_s25 = sadd.s32 1, %s1676_s1  ;;  %p1390_p0 = scmp.ge.s32.totalorder %s1680_s2, 1  ;;  %s1680_s2 = sphi %s1729_s2, %s17_s2   ;;  %s1676_s1 = sphi %s1727_s1, %s2039_s1   ;;  %s1672_s24 = sphi %s1725_s24, %s2038_s24  }
   0x3   : > { %p31_p1 = scmp.ge.s32.totalorder %s29_s25, 2  ;;  %p316_p2 = scmp.lt.s32.totalorder %s1680_s2, 3 }
   0x5   : > { %s2041_s25 = smov (%p31_p1, %s29_s25), 0  ;;  %p317_p3 = pnand %p1390_p0, %p316_p2 }
   0x6   : > { %v1597_v0 = vld [vmem:[%s2033_s3 + $0x40] sm:$0xff] (!%p317_p3)   ;;  %v1601_v4 = vld [vmem:[%s2033_s3 + $0x48] sm:$0xff] (!%p317_p3)   ;;  %v1605_v8 = vld [vmem:[%s2033_s3 + $0x50] sm:$0xff] (!%p317_p3)   ;;  %v1682_v11 = vmov (!%p317_p3), 0   ;;  %v477_v15 = vlaneseq (!%p317_p3)  ;;  %p381_p4 = scmp.lt.s32.totalorder (!%p317_p3), %s1672_s24, 1  ;;  %v1683_v54 = vmov (!%p317_p3), 0.0  }
   0x7   : > { %320 = sbr.rel (%p317_p3) target bundleno = 467 (0x1d3), region = 48  ;;  %v1598_v1 = vld [vmem:[%s2033_s3] sm:$0xff] (!%p317_p3)   ;;  %1475 = vmatprep.subr.bf16.mxu0 (!%p317_p3), %v1597_v0  ;;  %v1602_v5 = vld [vmem:[%s2033_s3 + $0x8] sm:$0xff] (!%p317_p3)   ;;  %v1606_v9 = vld [vmem:[%s2033_s3 + $0x10] sm:$0xff] (!%p317_p3)   ;;  %v1399_v12 = vcombine.low (!%p317_p3), %v1682_v11, %v1682_v11  ;;  %vm1684_vm2 = vmmov (!%p317_p3), 0   ;;  %vm1171_vm3 = vcmask (!%p317_p3), 261120  }
   0x8   : > { %v1599_v2 = vld [vmem:[%s2033_s3 + $0xc0] sm:$0xff] (!%p317_p3)   ;;  %1476 = vmatpush3.bf16.msra.mxu0 (!%p317_p3), %v1598_v1  ;;  %v1603_v6 = vld [vmem:[%s2033_s3 + $0xc8] sm:$0xff] (!%p317_p3)   ;;  %v1607_v10 = vld [vmem:[%s2033_s3 + $0xd0] sm:$0xff] (!%p317_p3)   ;;  %v1796_v22 = vshrl.u32 (!%p317_p3), %v477_v15, 7  ;;  %vm1245_vm5 = vcmask (!%p317_p3), 257024  }
   0x9   : > { %v1600_v3 = vld [vmem:[%s2033_s3 + $0x80] sm:$0xff] (!%p317_p3)   ;;  %1497 = vmatprep.subr.bf16.mxu1 (!%p317_p3), %v1599_v2  ;;  %1477 = vmatprep.subr.bf16.mxu0 (!%p317_p3), %v1601_v4  ;;  %v1604_v7 = vld [vmem:[%s2033_s3 + $0x88] sm:$0xff] (!%p317_p3)   ;;  %v1608_v13 = vld [vmem:[%s2033_s3 + $0x90] sm:$0xff] (!%p317_p3)   ;;  %v465_v18 = vunpack.c.l.bf16 (!%p317_p3), %v1399_v12  ;;  %v466_v20 = vunpack.c.h.bf16 (!%p317_p3), %v1399_v12 }
   0xa   : > { %1498 = vmatpush3.bf16.msra.mxu1 (!%p317_p3), %v1600_v3  ;;  %v1609_v14 = vld [vmem:[%s2033_s3 + $0x58] sm:$0xff] (!%p317_p3)   ;;  %v1613_v21 = vld [vmem:[%s2033_s3 + $0x60] sm:$0xff] (!%p317_p3)   ;;  %v1617_v28 = vld [vmem:[%s2033_s3 + $0x68] sm:$0xff] (!%p317_p3)   ;;  %vm479_vm0 = vcmp.lt.s32.totalorder (!%p317_p3), %v1796_v22, 3  ;;  %vm492_vm1 = vcmp.lt.s32.totalorder (!%p317_p3), %v1796_v22, 7 }
   0xb   : > { %1499 = vmatprep.subr.bf16.mxu1 (!%p317_p3), %v1603_v6  ;;  %v1610_v16 = vld [vmem:[%s2033_s3 + $0x18] sm:$0xff] (!%p317_p3)   ;;  %v1614_v23 = vld [vmem:[%s2033_s3 + $0x20] sm:$0xff] (!%p317_p3)   ;;  %v471_v25 = vrot.slane (!%p317_p3), %v465_v18, 5  ;;  %v472_v27 = vrot.slane (!%p317_p3), %v466_v20, 5  ;;  %v1618_v29 = vld [vmem:[%s2033_s3 + $0x28] sm:$0xff] (!%p317_p3)  }
   0xc   : > { %1478 = vmatpush3.bf16.msra.mxu0 (!%p317_p3), %v1602_v5  ;;  %v1611_v17 = vld [vmem:[%s2033_s3 + $0xd8] sm:$0xff] (!%p317_p3)   ;;  %v1615_v24 = vld [vmem:[%s2033_s3 + $0xe0] sm:$0xff] (!%p317_p3)   ;;  %v1619_v30 = vld [vmem:[%s2033_s3 + $0xe8] sm:$0xff] (!%p317_p3)  }
   0xd   : > { %1479 = vmatprep.subr.bf16.mxu0 (!%p317_p3), %v1605_v8  ;;  %v1612_v19 = vld [vmem:[%s2033_s3 + $0x98] sm:$0xff] (!%p317_p3)   ;;  %v1616_v26 = vld [vmem:[%s2033_s3 + $0xa0] sm:$0xff] (!%p317_p3)   ;;  %v1620_v31 = vld [vmem:[%s2033_s3 + $0xa8] sm:$0xff] (!%p317_p3)   ;;  %v480_v32 = vsel (!%p317_p3), %vm479_vm0, %v471_v25, %v472_v27  ;;  %v485_v34 = vsel (!%p317_p3), %vm479_vm0, %v472_v27, %v471_v25 }
   0xe   : > { %1500 = vmatpush3.bf16.msra.mxu1 %v1604_v7  ;;  %s2043_s24 = smov (!%p381_p4, %s1672_s24), 1  ;;  %v1621_v33 = vld [vmem:[%s2033_s3 + $0x70] sm:$0xff]   ;;  %v489_v37 = vrot.slane %v480_v32, 1  ;;  %v490_v39 = vrot.slane %v485_v34, 1  ;;  %v1625_v40 = vld [vmem:[%s2033_s3 + $0x78] sm:$0xff]   ;;  %v1630_v50 = vld [vmem:[%s2033_s3 + $0x140] sm:$0xff]  }
   0xf   : > { %1501 = vmatprep.subr.bf16.mxu1 %v1607_v10  ;;  %v1622_v35 = vld [vmem:[%s2033_s3 + $0x30] sm:$0xff]   ;;  %s1467_s13 = sshll.u32 %s2043_s24, 3  ;;  %v1626_v41 = vld [vmem:[%s2033_s3 + $0x38] sm:$0xff]   ;;  %v1631_v8 = vld [vmem:[%s2033_s3 + $0x100] sm:$0xff]  }
  0x10   : > { %1480 = vmatpush3.bf16.msra.mxu0 %v1606_v9  ;;  %v1623_v36 = vld [vmem:[%s2033_s3 + $0xf0] sm:$0xff]   ;;  %s388_s22 = scalar_lea.vmem %s2030_s0, %s1467_s13  ;;  %v493_v42 = vsel %vm492_vm1, %v490_v39, %v489_v37  ;;  %v1627_v43 = vld [vmem:[%s2033_s3 + $0xf8] sm:$0xff]   ;;  %v494_v45 = vsel %vm492_vm1, %v489_v37, %v490_v39  ;;  %v1633_v10 = vld [vmem:[%s2033_s3 + $0x148] sm:$0xff]   ;;  %s430_s27 = scalar_lea.vmem %s2037_s7, %s1467_s13 }
  0x11   : > { %1481 = vmatprep.subr.bf16.mxu0 %v1609_v14  ;;  %v1624_v38 = vld [vmem:[%s2033_s3 + $0xb0] sm:$0xff]   ;;  %v1628_v44 = vld [vmem:[%s388_s22] sm:$0xff]   ;;  %v503_v46 = vrot.slane %v493_v42, 1  ;;  %v1629_v47 = vld [vmem:[%s2033_s3 + $0xb8] sm:$0xff]   ;;  %v502_v51 = vrot.slane %v494_v45, 1 }
  0x12   : > { %1502 = vmatpush3.bf16.msra.mxu1 %v1608_v13  ;;  %v467_v48 = vunpack.c.l.bf16 %v1628_v44  ;;  %v468_v49 = vunpack.c.h.bf16 %v1628_v44  ;;  %v1632_v32 = vld [vmem:[%s2033_s3 + $0x180] sm:$0xff]   ;;  %v1635_v42 = vld [vmem:[%s2033_s3 + $0x188] sm:$0xff]   ;;  %v1640_v44 = vld [vmem:[%s2033_s3 + $0x118] sm:$0xff]  }
  0x13   : > { %1503 = vmatprep.subr.bf16.mxu1 %v1611_v17  ;;  %v506_v55 = vsel %vm492_vm1, %v502_v51, %v503_v46 }
  0x14   : > { %1482 = vmatpush3.bf16.msra.mxu0 %v1610_v16  ;;  %v473_v52 = vrot.slane %v467_v48, 5  ;;  %v474_v53 = vrot.slane %v468_v49, 5  ;;  %v514_v63 = vrot.slane %v506_v55, 1  ;;  %v1641_v55 = vld [vmem:[%s2033_s3 + $0x198] sm:$0xff]  }
  0x15   : > { %1483 = vmatprep.subr.bf16.mxu0 %v1613_v21  ;;  %v1636_v21 = vld [vmem:[%s2033_s3 + $0x150] sm:$0xff]  }
  0x16   : > { %1504 = vmatpush3.bf16.msra.mxu1 %v1612_v19  ;;  %v481_v56 = vsel %vm479_vm0, %v474_v53, %v471_v25  ;;  %v482_v57 = vsel %vm479_vm0, %v473_v52, %v474_v53  ;;  %v483_v58 = vsel %vm479_vm0, %v472_v27, %v473_v52  ;;  %v1634_v19 = vld [vmem:[%s2033_s3 + $0x108] sm:$0xff]  }
  0x17   : > { %1505 = vmatprep.subr.bf16.mxu1 %v1615_v24  ;;  %v486_v59 = vrot.slane %v483_v58, 1  ;;  %v487_v60 = vrot.slane %v482_v57, 1  ;;  %v488_v61 = vrot.slane %v481_v56, 1  ;;  %v543_v62 = vpack.c.bf16 %v482_v57, %v483_v58  ;;  %v1645_v53 = vld [vmem:[%s2033_s3 + $0x168] sm:$0xff]   ;;  %v1648_v57 = vld [vmem:[%s2033_s3 + $0x170] sm:$0xff]  }
  0x18   : > { %1484 = vmatpush3.bf16.msra.mxu0 %v1614_v23  ;;  %v1646_v56 = vld [vmem:[%s2033_s3 + $0x128] sm:$0xff]  }
  0x19   : > { %1485 = vmatprep.subr.bf16.mxu0 %v1617_v28  ;;  %v495_v0 = vsel %vm492_vm1, %v488_v61, %v489_v37  ;;  %v496_v1 = vsel %vm492_vm1, %v487_v60, %v488_v61  ;;  %v497_v2 = vsel %vm492_vm1, %v486_v59, %v487_v60  ;;  %v498_v3 = vsel %vm492_vm1, %v489_v37, %v486_v59  ;;  %v1644_v59 = vld [vmem:[%s2033_s3 + $0x1a0] sm:$0xff]   ;;  %v1649_v60 = vld [vmem:[%s2033_s3 + $0x130] sm:$0xff]  }
  0x1a   : > { %1506 = vmatpush3.bf16.msra.mxu1 %v1616_v26  ;;  %v499_v4 = vrot.slane %v497_v2, 1  ;;  %v500_v5 = vrot.slane %v496_v1, 1  ;;  %v504_v6 = vrot.slane %v498_v3, 1  ;;  %v544_v7 = vpack.c.bf16 %v496_v1, %v497_v2  ;;  %v1650_v2 = vld [vmem:[%s2033_s3 + $0x1b0] sm:$0xff]  }
  0x1b   : > { %1507 = vmatprep.subr.bf16.mxu1 %v1619_v30  ;;  %v501_v9 = vrot.slane %v495_v0, 1  ;;  %v1652_v0 = vld [vmem:[%s2033_s3 + $0x138] sm:$0xff]  }
  0x1c   : > { %1486 = vmatpush3.bf16.msra.mxu0 %v1618_v29  ;;  %v505_v11 = vsel %vm492_vm1, %v503_v46, %v504_v6  ;;  %1037 = vmatprep.mubr.bf16.mxu0 %v544_v7  ;;  %v509_v12 = vsel %vm492_vm1, %v499_v4, %v500_v5  ;;  %v510_v20 = vsel %vm492_vm1, %v504_v6, %v499_v4  ;;  %v1642_v46 = vld [vmem:[%s2033_s3 + $0x160] sm:$0xff]   ;;  %v1653_v7 = vld [vmem:[%s2033_s3 + $0x1b8] sm:$0xff]  }
  0x1d   : > { %1487 = vmatprep.subr.bf16.mxu0 %v1621_v33  ;;  %v515_v13 = vrot.slane %v505_v11, 1  ;;  %v507_v14 = vsel %vm492_vm1, %v501_v9, %v502_v51  ;;  %v508_v15 = vsel %vm492_vm1, %v500_v5, %v501_v9  ;;  %v511_v16 = vrot.slane %v509_v12, 1  ;;  %v1637_v33 = vld [vmem:[%s2033_s3 + $0x110] sm:$0xff]   ;;  %v1643_v51 = vld [vmem:[%s2033_s3 + $0x120] sm:$0xff]  }
  0x1e   : > { %1508 = vmatpush3.bf16.msra.mxu1 %v1620_v31  ;;  %v512_v17 = vrot.slane %v508_v15, 1  ;;  %v513_v18 = vrot.slane %v507_v14, 1  ;;  %v545_v27 = vpack.c.bf16 %v508_v15, %v509_v12 }
  0x1f   : > { %1509 = vmatprep.subr.bf16.mxu1 %v1623_v36  ;;  %v518_v23 = vsel %vm492_vm1, %v514_v63, %v515_v13 }
  0x20   : > { %1488 = vmatpush3.bf16.msra.mxu0 %v1622_v35  ;;  %v519_v24 = vsel %vm492_vm1, %v513_v18, %v514_v63  ;;  %v520_v25 = vsel %vm492_vm1, %v512_v17, %v513_v18  ;;  %v521_v26 = vsel %vm492_vm1, %v511_v16, %v512_v17  ;;  %v525_v34 = vrot.slane %v518_v23, 1  ;;  %v1647_v63 = vld [vmem:[%s2033_s3 + $0x1a8] sm:$0xff]   ;;  %v1402_v16 = vld [vmem:[%s2034_s4] ss:$0 sm:$0xff] }
  0x21   : > { %1489 = vmatprep.subr.bf16.mxu0 %v1625_v40  ;;  %v522_v28 = vrot.slane %v521_v26, 1  ;;  %v523_v29 = vrot.slane %v520_v25, 1  ;;  %v524_v30 = vrot.slane %v519_v24, 1  ;;  %v546_v31 = vpack.c.bf16 %v520_v25, %v521_v26 }
  0x22   : > { %1510 = vmatpush3.bf16.msra.mxu1 %v1624_v38  ;;  %v516_v35 = vrot.slane %v510_v20, 1  ;;  %v1639_v38 = vld [vmem:[%s2033_s3 + $0x158] sm:$0xff]  }
  0x23   : > { %1511 = vmatprep.subr.bf16.mxu1 %v1627_v43  ;;  %v1921_v36 = vsel %vm492_vm1, %v523_v29, %v524_v30  ;;  %v1925_v37 = vsel %vm492_vm1, %v522_v28, %v523_v29  ;;  %1078 = vmatprep.mubr.bf16.mxu1 %v546_v31 }
  0x24   : > { %1490 = vmatpush3.bf16.msra.mxu0 %v1626_v41  ;;  %v531_v39 = vrot.slane %v1925_v37, 1  ;;  %v532_v40 = vrot.slane %v1921_v36, 1  ;;  %v528_v41 = vsel %vm492_vm1, %v524_v30, %v525_v34  ;;  %v517_v48 = vsel %vm492_vm1, %v515_v13, %v516_v35 }
  0x25   : > { %1519 = vmatprep.subr.bf16.mxu0 %v1630_v50  ;;  %v533_v43 = vrot.slane %v528_v41, 1  ;;  %v1638_v50 = vld [vmem:[%s2033_s3 + $0x190] sm:$0xff]   ;;  %v526_v52 = vrot.slane %v517_v48, 1  ;;  %v547_v5 = vpack.c.bf16 %v1921_v36, %v1925_v37 }
  0x26   : > { %1512 = vmatpush3.bf16.msra.mxu1 %v1629_v47  ;;  %v537_v45 = vsel %vm492_vm1, %v531_v39, %v532_v40 }
  0x27   : > { %1550 = vmatprep.subr.bf16.mxu1 %v1683_v54  ;;  %1038 = vmatmul.mubr.bf16.vlgmr.msra.gmra.mrb[0].mxu0 %v543_v62  ;;  %v536_v47 = vsel %vm492_vm1, %v532_v40, %v533_v43  ;;  %v527_v58 = vsel %vm492_vm1, %v525_v34, %v526_v52  ;;  %v1651_v62 = vld [vmem:[%s2033_s3 + $0x178] sm:$0xff]   ;;  %v538_v3 = vrot.slane %v537_v45, 1 }
  0x28   : > { %1520 = vmatpush3.bf16.msra.mxu0 %v1631_v8  ;;  %v548_v49 = vpack.c.bf16 %v536_v47, %v537_v45  ;;  %v534_v61 = vrot.slane %v527_v58, 1  ;;  %v539_v4 = vrot.slane %v536_v47, 1 }
  0x29   : > { %1521 = vmatprep.subr.bf16.mxu0 %v1633_v10  ;;  %1079 = vmatmul.mubr.bf16.vlgmr.msra.gmra.mrb[0].mxu1 %v545_v27 }
  0x2a   : > { %1551 = vmatpush3.bf16.msra.mxu1 %v1632_v32  ;;  %1566 = vmatprep.mubr.msk.bf16.mxu1 %vm1684_vm2, %v1683_v54  ;;  %v535_v1 = vsel %vm492_vm1, %v533_v43, %v534_v61  ;;  %v542_v9 = vsel %vm492_vm1, %v538_v3, %v539_v4 }
  0x2b   : > { %1552 = vmatprep.subr.bf16.mxu1 %v1683_v54  ;;  %1119 = vmatprep.mubr.bf16.mxu0 %v548_v49  ;;  %v540_v6 = vrot.slane %v535_v1, 1  ;;  %v1225_v1 = vadd.s32 8, %v1796_v22 }
  0x2c   : > { %1522 = vmatpush3.bf16.msra.mxu0 %v1634_v19 }
  0x2d   : > { %1523 = vmatprep.subr.bf16.mxu0 %v1636_v21  ;;  %v541_v8 = vsel %vm492_vm1, %v539_v4, %v540_v6  ;;  %v1460_v4 = vld [vmem:[%s2036_s6] ss:$0 sm:$0xff]  ;;  %vm1230_vm4 = vcmp.lt.s32.totalorder %v1225_v1, 9 }
  0x2e   : > { %1553 = vmatpush3.bf16.msra.mxu1 %v1635_v42  ;;  %v549_v10 = vpack.c.bf16 %v541_v8, %v542_v9 }
  0x2f   : > { %1554 = vmatprep.subr.bf16.mxu1 %v1683_v54 }
  0x30   : > { %1524 = vmatpush3.bf16.msra.mxu0 %v1637_v33 }
  0x31   : > { %1525 = vmatprep.subr.bf16.mxu0 %v1639_v38 }
  0x32   : > { %1555 = vmatpush3.bf16.msra.mxu1 %v1638_v50 }
  0x33   : > { %1556 = vmatprep.subr.bf16.mxu1 %v1683_v54 }
  0x34   : > { %1526 = vmatpush3.bf16.msra.mxu0 %v1640_v44 }
  0x35   : > { %1527 = vmatprep.subr.bf16.mxu0 %v1642_v46 }
  0x36   : > { %1557 = vmatpush3.bf16.msra.mxu1 %v1641_v55 }
  0x37   : > { %1558 = vmatprep.subr.bf16.mxu1 %v1683_v54 }
  0x38   : > { %1528 = vmatpush3.bf16.msra.mxu0 %v1643_v51 }
  0x39   : > { %1529 = vmatprep.subr.bf16.mxu0 %v1645_v53 }
  0x3a   : > { %1559 = vmatpush3.bf16.msra.mxu1 %v1644_v59 }
  0x3b   : > { %1560 = vmatprep.subr.bf16.mxu1 %v1683_v54 }
  0x3c   : > { %1530 = vmatpush3.bf16.msra.mxu0 %v1646_v56 }
  0x3d   : > { %1531 = vmatprep.subr.bf16.mxu0 %v1648_v57 }
  0x3e   : > { %1561 = vmatpush3.bf16.msra.mxu1 %v1647_v63 }
  0x3f   : > { %1562 = vmatprep.subr.bf16.mxu1 %v1683_v54 }
  0x40   : > { %1532 = vmatpush3.bf16.msra.mxu0 %v1649_v60 }
  0x41   : > { %1533 = vmatprep.subr.bf16.mxu0 %v1651_v62 }
  0x42   : > { %1563 = vmatpush3.bf16.msra.mxu1 %v1650_v2  ;;  %v1459_v2 = vld [vmem:[%s2035_s5] ss:$0 sm:$0xff] }
  0x43   : > { %1564 = vmatprep.subr.bf16.mxu1 %v1683_v54 }
  0x44   : > { %1534 = vmatpush3.bf16.msra.mxu0 %v1652_v0 }
  0x46   : > { %1565 = vmatpush3.bf16.msra.mxu1 %v1653_v7 }
  0x47   : > { %1120 = vmatmul.mubr.bf16.vlgmr.msra.gmra.mrb[4].mxu0 %v547_v5 }
  0x49   : > { %1567 = vmatmul.mubr.bf16.vlgmr.msra.gmra.mrb[4].mxu1 %v549_v10 }
  0xfa   : > { %v1491_v11 = vpop.f32.mrb[0].mxu0 }
  0xfb   : > { %v1492_v12 = vpop.f32.mrb[1].mxu0 }
  0xfc   : > { %v1493_v13 = vadd.f32 %v1492_v12, %v1491_v11  ;;  %v1494_v14 = vpop.f32.mrb[2].mxu0  ;;  %v1513_v19 = vpop.f32.mrb[0].mxu1 }
  0xfd   : > { %v1495_v15 = vpop.f32.mrb[3].mxu0  ;;  %v1514_v20 = vpop.f32.mrb[1].mxu1 }
  0xfe   : > { %v1496_v17 = vadd.f32 %v1495_v15, %v1494_v14  ;;  %v1040_v18 = vadd.f32 %v1493_v13, %v1402_v16  ;;  %v1515_v23 = vadd.f32 %v1514_v20, %v1513_v19  ;;  %v1516_v24 = vpop.f32.mrb[2].mxu1 }
  0xff   : > { %v1517_v54 = vpop.f32.mrb[3].mxu1 }
 0x100   : > { %v1043_v21 = vadd.f32 %v1496_v17, %v1402_v16  ;;  %v1081_v25 = vadd.f32 %v1515_v23, %v1040_v18  ;;  %v1518_v26 = vadd.f32 %v1517_v54, %v1516_v24 }
 0x102   : > { %v1084_v27 = vadd.f32 %v1518_v26, %v1043_v21 }
 0x11a   : > { %v1535_v28 = vpop.f32.mrb[4].mxu0 }
 0x11b   : > { %v1536_v29 = vpop.f32.mrb[5].mxu0 }
 0x11c   : > { %v1537_v30 = vadd.f32 %v1536_v29, %v1535_v28  ;;  %v1538_v31 = vpop.f32.mrb[6].mxu0  ;;  %v1162_v36 = vpop.f32.mrb[4].mxu1 }
 0x11d   : > { %v1539_v32 = vpop.f32.mrb[7].mxu0  ;;  %v1568_v38 = vpop.f32.mrb[5].mxu1 }
 0x11e   : > { %v1122_v33 = vadd.f32 %v1537_v30, %v1081_v25  ;;  %v1540_v34 = vadd.f32 %v1539_v32, %v1538_v31  ;;  %v1165_v39 = vpop.f32.mrb[6].mxu1 }
 0x11f   : > { %v1569_v41 = vpop.f32.mrb[7].mxu1 }
 0x120   : > { %v1125_v35 = vadd.f32 %v1540_v34, %v1084_v27  ;;  %v1163_v37 = vadd.f32 %v1162_v36, %v1122_v33 }
 0x122   : > { %v1166_v40 = vadd.f32 %v1165_v39, %v1125_v35  ;;  %v1181_v45 = vmul.f32 %v1163_v37, %v1163_v37  ;;  %v1172_v46 = vsel %vm1171_vm3, %v1163_v37, 0.0 }
 0x124   : > { %v1175_v42 = vsel %vm1171_vm3, %v1166_v40, 0.0  ;;  %v1182_v43 = vmul.f32 %v1166_v40, %v1166_v40  ;;  %v1183_v47 = vsel %vm1171_vm3, %v1181_v45, 0.0 }
 0x125   : > { %1176 = vadd.xlane.f32.xlu0 %v1175_v42 }
 0x126   : > { %v1186_v44 = vsel %vm1171_vm3, %v1182_v43, 0.0 }
 0x127   : > { %1187 = vadd.xlane.f32.xlu1 %v1186_v44 }
 0x129   : > { %1173 = vadd.xlane.f32.xlu0 %v1172_v46 }
 0x12b   : > { %1184 = vadd.xlane.f32.xlu1 %v1183_v47 }
 0x1b2   : > { %v1177_v48 = vpop.xlane.xlu0 %1176 }
 0x1b3   : > { %v1180_v49 = vmul.f32 0.03125, %v1177_v48 }
 0x1b4   : > { %v1188_v50 = vpop.xlane.xlu1 %1187 }
 0x1b5   : > { %v1192_v51 = vmul.f32 %v1180_v49, %v1180_v49  ;;  %v1190_v52 = vmul.f32 0.03125, %v1188_v50  ;;  %v1196_v63 = vsub.f32 %v1166_v40, %v1180_v49 }
 0x1b6   : > { %v1174_v53 = vpop.xlane.xlu0 %1173 }
 0x1b7   : > { %v1194_v55 = vsub.f32 %v1190_v52, %v1192_v51  ;;  %v1179_v56 = vmul.f32 0.03125, %v1174_v53 }
 0x1b8   : > { %v1185_v57 = vpop.xlane.xlu1 %1184 }
 0x1b9   : > { %v1198_v58 = vadd.f32 1e-05, %v1194_v55  ;;  %v1191_v59 = vmul.f32 %v1179_v56, %v1179_v56  ;;  %v1189_v60 = vmul.f32 0.03125, %v1185_v57  ;;  %v1195_v6 = vsub.f32 %v1163_v37, %v1179_v56 }
 0x1bb   : > { %1654 = vrsqrt.f32 %v1198_v58  ;;  %v1193_v61 = vsub.f32 %v1189_v60, %v1191_v59 }
 0x1bd   : > { %v1197_v62 = vadd.f32 1e-05, %v1193_v61 }
 0x1bf   : > { %1656 = vrsqrt.f32 %v1197_v62 }
 0x1c5   : > { %v1655_v0 = vpop.eup %1654 }
 0x1c6   : > { %v1202_v3 = vmul.f32 %v1655_v0, %v1196_v63 }
 0x1c8   : > { %v1210_v5 = vmul.f32 %v1459_v2, %v1202_v3 }
 0x1c9   : > { %v1657_v7 = vpop.eup %1656 }
 0x1ca   : > { %v1218_v8 = vadd.f32 %v1460_v4, %v1210_v5  ;;  %v1201_v9 = vmul.f32 %v1657_v7, %v1195_v6 }
 0x1cc   : > { %v1236_v22 = vsel %vm1230_vm4, %v1218_v8, 0.0  ;;  %v1209_v10 = vmul.f32 %v1459_v2, %v1201_v9 }
 0x1cd   : > { %v1472_v11 = vpack.c.bf16 %v1236_v22, %v1236_v22 }
 0x1ce   : > { %v1217_v12 = vadd.f32 %v1460_v4, %v1209_v10 }
 0x1cf   : > { %1247 = vst.msk [vmem:[%s430_s27 + $0x4] sm:$0xf] %vm1245_vm5, %v1472_v11 }
 0x1d0   : > { %v1471_v13 = vpack.c.bf16 %v1217_v12, %v1217_v12 }
 0x1d2   : > { %1246 = vst.msk [vmem:[%s430_s27] sm:$0xf] %vm1245_vm5, %v1471_v13 }
 0x1d3 PF: > { %s17_s2 = sadd.s32 1, %s1680_s2   ;;  %s2038_s24 = smov %s1676_s1 }
 0x1d4   : > { %p14_p5 = scmp.ge.s32.totalorder %s17_s2, 4   ;;  %s2039_s1 = smov %s2041_s25 }
 0x1d6   :  { %16 = sbr.rel (!%p14_p5) target bundleno = 2 (0x2), region = 92 }

</bundles_post_ra>
